<compile_context>
chip_gen: v7x
topology: tpu7x:2x2x1
jax: 0.10.0
libtpu: 0.0.40
codegen_flags: <defaults>
</compile_context>

<pallas_src>
import functools

import jax
import jax.numpy as jnp
from jax.experimental import pallas as pl
from jax.experimental.pallas import tpu as pltpu

BN_EPS = 1e-5


# ----------------------------- Pallas kernel ------------------------------- #
def _postnet_fused_kernel(x_ref, *refs, n_layers, ksize, t_len, pad):
    """Fused L x (Conv1d + folded BatchNorm [+ tanh]) for one batch element.

    x_ref : [1, T, C_in]                      input block (f32)
    refs  : (w_0, b_0, ..., w_{L-1}, b_{L-1}, o_ref, in_buf, buf_a, buf_b)
      w_l   : [K, Cin_l, Cout_l] bf16  (BN scale folded in)
      b_l   : [1, Cout_l]        f32   (BN shift folded in)
      o_ref : [1, T, C_out]            output block
      in_buf: [T + 2*pad, C_in]  bf16  VMEM scratch (SAME-padded input)
      buf_a / buf_b: [T + 2*pad, E] bf16 VMEM ping-pong activation buffers
    """
    w_refs = refs[0:2 * n_layers:2]
    b_refs = refs[1:2 * n_layers:2]
    o_ref = refs[2 * n_layers]
    in_buf, buf_a, buf_b = refs[2 * n_layers + 1:]

    # SAME padding lives in zero-initialised VMEM scratch; never touches HBM.
    in_buf[...] = jnp.zeros_like(in_buf)
    buf_a[...] = jnp.zeros_like(buf_a)
    buf_b[...] = jnp.zeros_like(buf_b)
    in_buf[pl.ds(pad, t_len), :] = x_ref[0].astype(in_buf.dtype)

    src = in_buf
    ping_pong = (buf_a, buf_b)
    for layer in range(n_layers):              # static unroll over layers
        w = w_refs[layer]
        cout = w.shape[-1]
        xs = src[...]                          # [T + 2*pad, Cin] bf16
        acc = jnp.zeros((t_len, cout), jnp.float32)
        for k in range(ksize):                 # static unroll: K MXU matmuls
            acc += jnp.dot(xs[k:k + t_len, :], w[k],
                           preferred_element_type=jnp.float32)
        y = acc + b_refs[layer][...]           # folded conv + BN bias (f32)
        if layer < n_layers - 1:
            y = jnp.tanh(y)                    # EUP; all layers but the last
            dst = ping_pong[layer % 2]
            dst[pl.ds(pad, t_len), :] = y.astype(dst.dtype)
            src = dst
        else:
            o_ref[0] = y.astype(o_ref.dtype)
    # TODO(synk): F.dropout(p=0.5) is identity in eval mode; not implemented.


# ------------------------------- wrapper ----------------------------------- #
def postnet_forward(ws_bf16, bs_f32, x):
    """x: [B, T, n_channels] -> [B, T, n_channels] (NTC layout throughout)."""
    B, T, C0 = x.shape
    n_layers = len(ws_bf16)
    K = ws_bf16[0].shape[0]
    E = ws_bf16[0].shape[-1]
    pad = (K - 1) // 2
    Tp = T + 2 * pad

    kern = functools.partial(_postnet_fused_kernel,
                             n_layers=n_layers, ksize=K, t_len=T, pad=pad)

    in_specs = [pl.BlockSpec((1, T, C0), lambda i: (i, 0, 0))]
    operands = [x]
    for w, b in zip(ws_bf16, bs_f32):
        kk, cin, cout = w.shape
        in_specs.append(pl.BlockSpec((kk, cin, cout), lambda i: (0, 0, 0)))
        in_specs.append(pl.BlockSpec((1, cout), lambda i: (0, 0)))
        operands.extend([w, b])

    return pl.pallas_call(
        kern,
        out_shape=jax.ShapeDtypeStruct((B, T, C0), x.dtype),
        grid=(B,),
        in_specs=in_specs,
        out_specs=pl.BlockSpec((1, T, C0), lambda i: (i, 0, 0)),
        scratch_shapes=[
            pltpu.VMEM((Tp, C0), jnp.bfloat16),
            pltpu.VMEM((Tp, E), jnp.bfloat16),
            pltpu.VMEM((Tp, E), jnp.bfloat16),
        ],
        compiler_params=pltpu.CompilerParams(
            dimension_semantics=("parallel",),
            vmem_limit_bytes=48 * 1024 * 1024,
        ),
    )(*operands)


# -------------------------- params & reference ------------------------------ #
def init_postnet_params(key, n_channels, embedding_dim, kernel_size, conv_layers):
    """Random Conv1d + BatchNorm1d (eval) params, BN folded into conv.

    Conv weight stored as [K, Cin, Cout] (PyTorch Conv1d weight is [Cout, Cin, K]).
    Folding:  scale = gamma / sqrt(running_var + eps)
              w_fold = w * scale[cout];  b_fold = (b_conv - running_mean)*scale + beta
    """
    chans_in = [n_channels] + [embedding_dim] * (conv_layers - 1)
    chans_out = [embedding_dim] * (conv_layers - 1) + [n_channels]
    ws_f32, bs_f32 = [], []
    for cin, cout in zip(chans_in, chans_out):
        key, kw, kb, kg, kbe, km, kv = jax.random.split(key, 7)
        w = 0.05 * jax.random.normal(kw, (kernel_size, cin, cout), jnp.float32)
        b = 0.05 * jax.random.normal(kb, (cout,), jnp.float32)
        gamma = 1.0 + 0.1 * jax.random.normal(kg, (cout,), jnp.float32)
        beta = 0.1 * jax.random.normal(kbe, (cout,), jnp.float32)
        mean = 0.1 * jax.random.normal(km, (cout,), jnp.float32)
        var = jax.random.uniform(kv, (cout,), jnp.float32, 0.5, 1.5)
        scale = gamma / jnp.sqrt(var + BN_EPS)
        ws_f32.append(w * scale[None, None, :])
        bs_f32.append(((b - mean) * scale + beta)[None, :])   # [1, cout]
    ws_bf16 = [w.astype(jnp.bfloat16) for w in ws_f32]
    return ws_f32, bs_f32, ws_bf16


def postnet_ref(ws_f32, bs_f32, x):
    """Pure-JAX f32 reference of the folded conv/BN/tanh stack."""
    L = len(ws_f32)
    K = ws_f32[0].shape[0]
    pad = (K - 1) // 2
    T = x.shape[1]
    h = x
    for layer in range(L):
        hp = jnp.pad(h, ((0, 0), (pad, pad), (0, 0)))
        y = sum(jnp.einsum('btc,cd->btd', hp[:, k:k + T, :], ws_f32[layer][k])
                for k in range(K))
        y = y + bs_f32[layer][0]
        if layer < L - 1:
            y = jnp.tanh(y)
        h = y
    return h


if __name__ == "__main__":
    # Small shapes consistent with the module:
    # batch=2, seq(T)=16, n_channels=8, embedding_dim=32, kernel=5, 5 layers.
    B, T, N_CHANNELS = 2, 16, 8
    EMBEDDING_DIM, KERNEL_SIZE, CONV_LAYERS = 32, 5, 5

    key = jax.random.PRNGKey(0)
    key, kx = jax.random.split(key)
    x = jax.random.normal(kx, (B, T, N_CHANNELS), jnp.float32)

    ws_f32, bs_f32, ws_bf16 = init_postnet_params(
        key, N_CHANNELS, EMBEDDING_DIM, KERNEL_SIZE, CONV_LAYERS)

    out = postnet_forward(ws_bf16, bs_f32, x)
    out = jax.block_until_ready(out)

    assert out.shape == (B, T, N_CHANNELS), out.shape
    assert bool(jnp.all(jnp.isfinite(out)))

    ref = postnet_ref(ws_f32, bs_f32, x)
    max_err = float(jnp.max(jnp.abs(out - ref)))
    assert max_err < 5e-2, f"max abs err vs f32 reference: {max_err}"
    print("KERNEL_OK")
</pallas_src>

<mosaic_0001>
module attributes {stable_mosaic.version = 11 : i64} {
  func.func @_postnet_fused_kernel(%arg0: i32, %arg1: memref<1x16x8xf32, #tpu.memory_space<vmem>>, %arg2: memref<5x8x32xbf16, #tpu.memory_space<vmem>>, %arg3: memref<1x32xf32, #tpu.memory_space<vmem>>, %arg4: memref<5x32x32xbf16, #tpu.memory_space<vmem>>, %arg5: memref<1x32xf32, #tpu.memory_space<vmem>>, %arg6: memref<5x32x32xbf16, #tpu.memory_space<vmem>>, %arg7: memref<1x32xf32, #tpu.memory_space<vmem>>, %arg8: memref<5x32x32xbf16, #tpu.memory_space<vmem>>, %arg9: memref<1x32xf32, #tpu.memory_space<vmem>>, %arg10: memref<5x32x8xbf16, #tpu.memory_space<vmem>>, %arg11: memref<1x8xf32, #tpu.memory_space<vmem>>, %arg12: memref<1x16x8xf32, #tpu.memory_space<vmem>>, %arg13: memref<20x8xbf16, #tpu.memory_space<vmem>>, %arg14: memref<20x32xbf16, #tpu.memory_space<vmem>>, %arg15: memref<20x32xbf16, #tpu.memory_space<vmem>>) attributes {dimension_semantics = [#tpu.dimension_semantics<parallel>], iteration_bounds = array<i64: 2>, scalar_prefetch = 0 : i64, scratch_operands = 3 : i64, tpu.core_type = #tpu.core_type<tc>, window_params = [{transform_indices = @transform_0, window_bounds = array<i64: 1, 16, 8>}, {pipeline_mode = #tpu.pipeline_mode<synchronous>, transform_indices = @transform_1, window_bounds = array<i64: 5, 8, 32>}, {pipeline_mode = #tpu.pipeline_mode<synchronous>, transform_indices = @transform_2, window_bounds = array<i64: 1, 32>}, {pipeline_mode = #tpu.pipeline_mode<synchronous>, transform_indices = @transform_3, window_bounds = array<i64: 5, 32, 32>}, {pipeline_mode = #tpu.pipeline_mode<synchronous>, transform_indices = @transform_4, window_bounds = array<i64: 1, 32>}, {pipeline_mode = #tpu.pipeline_mode<synchronous>, transform_indices = @transform_5, window_bounds = array<i64: 5, 32, 32>}, {pipeline_mode = #tpu.pipeline_mode<synchronous>, transform_indices = @transform_6, window_bounds = array<i64: 1, 32>}, {pipeline_mode = #tpu.pipeline_mode<synchronous>, transform_indices = @transform_7, window_bounds = array<i64: 5, 32, 32>}, {pipeline_mode = #tpu.pipeline_mode<synchronous>, transform_indices = @transform_8, window_bounds = array<i64: 1, 32>}, {pipeline_mode = #tpu.pipeline_mode<synchronous>, transform_indices = @transform_9, window_bounds = array<i64: 5, 32, 8>}, {pipeline_mode = #tpu.pipeline_mode<synchronous>, transform_indices = @transform_10, window_bounds = array<i64: 1, 8>}, {transform_indices = @transform_11, window_bounds = array<i64: 1, 16, 8>}]} {
    %cst = arith.constant 0.000000e+00 : bf16
    %0 = vector.broadcast %cst : bf16 to vector<20x8xbf16>
    %c0 = arith.constant 0 : index
    %c0_0 = arith.constant 0 : index
    %1 = vector.load %arg13[%c0, %c0_0] : memref<20x8xbf16, #tpu.memory_space<vmem>>, vector<20x8xbf16>
    tpu.vector_store %arg13[%c0, %c0_0], %0 {strides = array<i32>} : memref<20x8xbf16, #tpu.memory_space<vmem>>, vector<20x8xbf16>,
    %cst_1 = arith.constant 0.000000e+00 : bf16
    %2 = vector.broadcast %cst_1 : bf16 to vector<20x32xbf16>
    %c0_2 = arith.constant 0 : index
    %c0_3 = arith.constant 0 : index
    %3 = vector.load %arg14[%c0_2, %c0_3] : memref<20x32xbf16, #tpu.memory_space<vmem>>, vector<20x32xbf16>
    tpu.vector_store %arg14[%c0_2, %c0_3], %2 {strides = array<i32>} : memref<20x32xbf16, #tpu.memory_space<vmem>>, vector<20x32xbf16>,
    %cst_4 = arith.constant 0.000000e+00 : bf16
    %4 = vector.broadcast %cst_4 : bf16 to vector<20x32xbf16>
    %c0_5 = arith.constant 0 : index
    %c0_6 = arith.constant 0 : index
    %5 = vector.load %arg15[%c0_5, %c0_6] : memref<20x32xbf16, #tpu.memory_space<vmem>>, vector<20x32xbf16>
    tpu.vector_store %arg15[%c0_5, %c0_6], %4 {strides = array<i32>} : memref<20x32xbf16, #tpu.memory_space<vmem>>, vector<20x32xbf16>,
    %c0_7 = arith.constant 0 : index
    %c0_8 = arith.constant 0 : index
    %c0_9 = arith.constant 0 : index
    %6 = vector.load %arg1[%c0_7, %c0_8, %c0_9] : memref<1x16x8xf32, #tpu.memory_space<vmem>>, vector<1x16x8xf32>
    %7 = vector.shape_cast %6 : vector<1x16x8xf32> to vector<16x8xf32>
    %8 = arith.truncf %7 : vector<16x8xf32> to vector<16x8xbf16>
    %c2 = arith.constant 2 : index
    %c0_10 = arith.constant 0 : index
    %9 = vector.load %arg13[%c2, %c0_10] : memref<20x8xbf16, #tpu.memory_space<vmem>>, vector<16x8xbf16>
    tpu.vector_store %arg13[%c2, %c0_10], %8 {strides = array<i32>} : memref<20x8xbf16, #tpu.memory_space<vmem>>, vector<16x8xbf16>,
    %c0_11 = arith.constant 0 : index
    %c0_12 = arith.constant 0 : index
    %10 = vector.load %arg13[%c0_11, %c0_12] : memref<20x8xbf16, #tpu.memory_space<vmem>>, vector<20x8xbf16>
    %cst_13 = arith.constant 0.000000e+00 : f32
    %11 = vector.broadcast %cst_13 : f32 to vector<16x32xf32>
    %12 = vector.extract_strided_slice %10 {offsets = [0, 0], sizes = [16, 8], strides = [1, 1]} : vector<20x8xbf16> to vector<16x8xbf16>
    %c0_14 = arith.constant 0 : index
    %c0_15 = arith.constant 0 : index
    %c0_16 = arith.constant 0 : index
    %13 = vector.load %arg2[%c0_14, %c0_15, %c0_16] : memref<5x8x32xbf16, #tpu.memory_space<vmem>>, vector<1x8x32xbf16>
    %14 = vector.shape_cast %13 : vector<1x8x32xbf16> to vector<8x32xbf16>
    %cst_17 = arith.constant dense<0.000000e+00> : vector<16x32xf32>
    %15 = tpu.matmul %12, %14, %cst_17 {dimension_numbers = #tpu.dot_dimension_numbers<[1], [0], [0], [1], [0, 0, 1, 1], [], []>} : vector<16x8xbf16>, vector<8x32xbf16>, vector<16x32xf32> -> vector<16x32xf32>
    %16 = arith.addf %11, %15 : vector<16x32xf32>
    %17 = vector.extract_strided_slice %10 {offsets = [1, 0], sizes = [16, 8], strides = [1, 1]} : vector<20x8xbf16> to vector<16x8xbf16>
    %c1 = arith.constant 1 : index
    %c0_18 = arith.constant 0 : index
    %c0_19 = arith.constant 0 : index
    %18 = vector.load %arg2[%c1, %c0_18, %c0_19] : memref<5x8x32xbf16, #tpu.memory_space<vmem>>, vector<1x8x32xbf16>
    %19 = vector.shape_cast %18 : vector<1x8x32xbf16> to vector<8x32xbf16>
    %cst_20 = arith.constant dense<0.000000e+00> : vector<16x32xf32>
    %20 = tpu.matmul %17, %19, %cst_20 {dimension_numbers = #tpu.dot_dimension_numbers<[1], [0], [0], [1], [0, 0, 1, 1], [], []>} : vector<16x8xbf16>, vector<8x32xbf16>, vector<16x32xf32> -> vector<16x32xf32>
    %21 = arith.addf %16, %20 : vector<16x32xf32>
    %22 = vector.extract_strided_slice %10 {offsets = [2, 0], sizes = [16, 8], strides = [1, 1]} : vector<20x8xbf16> to vector<16x8xbf16>
    %c2_21 = arith.constant 2 : index
    %c0_22 = arith.constant 0 : index
    %c0_23 = arith.constant 0 : index
    %23 = vector.load %arg2[%c2_21, %c0_22, %c0_23] : memref<5x8x32xbf16, #tpu.memory_space<vmem>>, vector<1x8x32xbf16>
    %24 = vector.shape_cast %23 : vector<1x8x32xbf16> to vector<8x32xbf16>
    %cst_24 = arith.constant dense<0.000000e+00> : vector<16x32xf32>
    %25 = tpu.matmul %22, %24, %cst_24 {dimension_numbers = #tpu.dot_dimension_numbers<[1], [0], [0], [1], [0, 0, 1, 1], [], []>} : vector<16x8xbf16>, vector<8x32xbf16>, vector<16x32xf32> -> vector<16x32xf32>
    %26 = arith.addf %21, %25 : vector<16x32xf32>
    %27 = vector.extract_strided_slice %10 {offsets = [3, 0], sizes = [16, 8], strides = [1, 1]} : vector<20x8xbf16> to vector<16x8xbf16>
    %c3 = arith.constant 3 : index
    %c0_25 = arith.constant 0 : index
    %c0_26 = arith.constant 0 : index
    %28 = vector.load %arg2[%c3, %c0_25, %c0_26] : memref<5x8x32xbf16, #tpu.memory_space<vmem>>, vector<1x8x32xbf16>
    %29 = vector.shape_cast %28 : vector<1x8x32xbf16> to vector<8x32xbf16>
    %cst_27 = arith.constant dense<0.000000e+00> : vector<16x32xf32>
    %30 = tpu.matmul %27, %29, %cst_27 {dimension_numbers = #tpu.dot_dimension_numbers<[1], [0], [0], [1], [0, 0, 1, 1], [], []>} : vector<16x8xbf16>, vector<8x32xbf16>, vector<16x32xf32> -> vector<16x32xf32>
    %31 = arith.addf %26, %30 : vector<16x32xf32>
    %32 = vector.extract_strided_slice %10 {offsets = [4, 0], sizes = [16, 8], strides = [1, 1]} : vector<20x8xbf16> to vector<16x8xbf16>
    %c4 = arith.constant 4 : index
    %c0_28 = arith.constant 0 : index
    %c0_29 = arith.constant 0 : index
    %33 = vector.load %arg2[%c4, %c0_28, %c0_29] : memref<5x8x32xbf16, #tpu.memory_space<vmem>>, vector<1x8x32xbf16>
    %34 = vector.shape_cast %33 : vector<1x8x32xbf16> to vector<8x32xbf16>
    %cst_30 = arith.constant dense<0.000000e+00> : vector<16x32xf32>
    %35 = tpu.matmul %32, %34, %cst_30 {dimension_numbers = #tpu.dot_dimension_numbers<[1], [0], [0], [1], [0, 0, 1, 1], [], []>} : vector<16x8xbf16>, vector<8x32xbf16>, vector<16x32xf32> -> vector<16x32xf32>
    %36 = arith.addf %31, %35 : vector<16x32xf32>
    %c0_31 = arith.constant 0 : index
    %c0_32 = arith.constant 0 : index
    %37 = vector.load %arg3[%c0_31, %c0_32] : memref<1x32xf32, #tpu.memory_space<vmem>>, vector<1x32xf32>
    %38 = vector.broadcast %37 : vector<1x32xf32> to vector<16x32xf32>
    %39 = arith.addf %36, %38 : vector<16x32xf32>
    %40 = math.tanh %39 : vector<16x32xf32>
    %41 = arith.truncf %40 : vector<16x32xf32> to vector<16x32xbf16>
    %c2_33 = arith.constant 2 : index
    %c0_34 = arith.constant 0 : index
    %42 = vector.load %arg14[%c2_33, %c0_34] : memref<20x32xbf16, #tpu.memory_space<vmem>>, vector<16x32xbf16>
    tpu.vector_store %arg14[%c2_33, %c0_34], %41 {strides = array<i32>} : memref<20x32xbf16, #tpu.memory_space<vmem>>, vector<16x32xbf16>,
    %c0_35 = arith.constant 0 : index
    %c0_36 = arith.constant 0 : index
    %43 = vector.load %arg14[%c0_35, %c0_36] : memref<20x32xbf16, #tpu.memory_space<vmem>>, vector<20x32xbf16>
    %cst_37 = arith.constant 0.000000e+00 : f32
    %44 = vector.broadcast %cst_37 : f32 to vector<16x32xf32>
    %45 = vector.extract_strided_slice %43 {offsets = [0, 0], sizes = [16, 32], strides = [1, 1]} : vector<20x32xbf16> to vector<16x32xbf16>
    %c0_38 = arith.constant 0 : index
    %c0_39 = arith.constant 0 : index
    %c0_40 = arith.constant 0 : index
    %46 = vector.load %arg4[%c0_38, %c0_39, %c0_40] : memref<5x32x32xbf16, #tpu.memory_space<vmem>>, vector<1x32x32xbf16>
    %47 = vector.shape_cast %46 : vector<1x32x32xbf16> to vector<32x32xbf16>
    %cst_41 = arith.constant dense<0.000000e+00> : vector<16x32xf32>
    %48 = tpu.matmul %45, %47, %cst_41 {dimension_numbers = #tpu.dot_dimension_numbers<[1], [0], [0], [1], [0, 0, 1, 1], [], []>} : vector<16x32xbf16>, vector<32x32xbf16>, vector<16x32xf32> -> vector<16x32xf32>
    %49 = arith.addf %44, %48 : vector<16x32xf32>
    %50 = vector.extract_strided_slice %43 {offsets = [1, 0], sizes = [16, 32], strides = [1, 1]} : vector<20x32xbf16> to vector<16x32xbf16>
    %c1_42 = arith.constant 1 : index
    %c0_43 = arith.constant 0 : index
    %c0_44 = arith.constant 0 : index
    %51 = vector.load %arg4[%c1_42, %c0_43, %c0_44] : memref<5x32x32xbf16, #tpu.memory_space<vmem>>, vector<1x32x32xbf16>
    %52 = vector.shape_cast %51 : vector<1x32x32xbf16> to vector<32x32xbf16>
    %cst_45 = arith.constant dense<0.000000e+00> : vector<16x32xf32>
    %53 = tpu.matmul %50, %52, %cst_45 {dimension_numbers = #tpu.dot_dimension_numbers<[1], [0], [0], [1], [0, 0, 1, 1], [], []>} : vector<16x32xbf16>, vector<32x32xbf16>, vector<16x32xf32> -> vector<16x32xf32>
    %54 = arith.addf %49, %53 : vector<16x32xf32>
    %55 = vector.extract_strided_slice %43 {offsets = [2, 0], sizes = [16, 32], strides = [1, 1]} : vector<20x32xbf16> to vector<16x32xbf16>
    %c2_46 = arith.constant 2 : index
    %c0_47 = arith.constant 0 : index
    %c0_48 = arith.constant 0 : index
    %56 = vector.load %arg4[%c2_46, %c0_47, %c0_48] : memref<5x32x32xbf16, #tpu.memory_space<vmem>>, vector<1x32x32xbf16>
    %57 = vector.shape_cast %56 : vector<1x32x32xbf16> to vector<32x32xbf16>
    %cst_49 = arith.constant dense<0.000000e+00> : vector<16x32xf32>
    %58 = tpu.matmul %55, %57, %cst_49 {dimension_numbers = #tpu.dot_dimension_numbers<[1], [0], [0], [1], [0, 0, 1, 1], [], []>} : vector<16x32xbf16>, vector<32x32xbf16>, vector<16x32xf32> -> vector<16x32xf32>
    %59 = arith.addf %54, %58 : vector<16x32xf32>
    %60 = vector.extract_strided_slice %43 {offsets = [3, 0], sizes = [16, 32], strides = [1, 1]} : vector<20x32xbf16> to vector<16x32xbf16>
    %c3_50 = arith.constant 3 : index
    %c0_51 = arith.constant 0 : index
    %c0_52 = arith.constant 0 : index
    %61 = vector.load %arg4[%c3_50, %c0_51, %c0_52] : memref<5x32x32xbf16, #tpu.memory_space<vmem>>, vector<1x32x32xbf16>
    %62 = vector.shape_cast %61 : vector<1x32x32xbf16> to vector<32x32xbf16>
    %cst_53 = arith.constant dense<0.000000e+00> : vector<16x32xf32>
    %63 = tpu.matmul %60, %62, %cst_53 {dimension_numbers = #tpu.dot_dimension_numbers<[1], [0], [0], [1], [0, 0, 1, 1], [], []>} : vector<16x32xbf16>, vector<32x32xbf16>, vector<16x32xf32> -> vector<16x32xf32>
    %64 = arith.addf %59, %63 : vector<16x32xf32>
    %65 = vector.extract_strided_slice %43 {offsets = [4, 0], sizes = [16, 32], strides = [1, 1]} : vector<20x32xbf16> to vector<16x32xbf16>
    %c4_54 = arith.constant 4 : index
    %c0_55 = arith.constant 0 : index
    %c0_56 = arith.constant 0 : index
    %66 = vector.load %arg4[%c4_54, %c0_55, %c0_56] : memref<5x32x32xbf16, #tpu.memory_space<vmem>>, vector<1x32x32xbf16>
    %67 = vector.shape_cast %66 : vector<1x32x32xbf16> to vector<32x32xbf16>
    %cst_57 = arith.constant dense<0.000000e+00> : vector<16x32xf32>
    %68 = tpu.matmul %65, %67, %cst_57 {dimension_numbers = #tpu.dot_dimension_numbers<[1], [0], [0], [1], [0, 0, 1, 1], [], []>} : vector<16x32xbf16>, vector<32x32xbf16>, vector<16x32xf32> -> vector<16x32xf32>
    %69 = arith.addf %64, %68 : vector<16x32xf32>
    %c0_58 = arith.constant 0 : index
    %c0_59 = arith.constant 0 : index
    %70 = vector.load %arg5[%c0_58, %c0_59] : memref<1x32xf32, #tpu.memory_space<vmem>>, vector<1x32xf32>
    %71 = vector.broadcast %70 : vector<1x32xf32> to vector<16x32xf32>
    %72 = arith.addf %69, %71 : vector<16x32xf32>
    %73 = math.tanh %72 : vector<16x32xf32>
    %74 = arith.truncf %73 : vector<16x32xf32> to vector<16x32xbf16>
    %c2_60 = arith.constant 2 : index
    %c0_61 = arith.constant 0 : index
    %75 = vector.load %arg15[%c2_60, %c0_61] : memref<20x32xbf16, #tpu.memory_space<vmem>>, vector<16x32xbf16>
    tpu.vector_store %arg15[%c2_60, %c0_61], %74 {strides = array<i32>} : memref<20x32xbf16, #tpu.memory_space<vmem>>, vector<16x32xbf16>,
    %c0_62 = arith.constant 0 : index
    %c0_63 = arith.constant 0 : index
    %76 = vector.load %arg15[%c0_62, %c0_63] : memref<20x32xbf16, #tpu.memory_space<vmem>>, vector<20x32xbf16>
    %cst_64 = arith.constant 0.000000e+00 : f32
    %77 = vector.broadcast %cst_64 : f32 to vector<16x32xf32>
    %78 = vector.extract_strided_slice %76 {offsets = [0, 0], sizes = [16, 32], strides = [1, 1]} : vector<20x32xbf16> to vector<16x32xbf16>
    %c0_65 = arith.constant 0 : index
    %c0_66 = arith.constant 0 : index
    %c0_67 = arith.constant 0 : index
    %79 = vector.load %arg6[%c0_65, %c0_66, %c0_67] : memref<5x32x32xbf16, #tpu.memory_space<vmem>>, vector<1x32x32xbf16>
    %80 = vector.shape_cast %79 : vector<1x32x32xbf16> to vector<32x32xbf16>
    %cst_68 = arith.constant dense<0.000000e+00> : vector<16x32xf32>
    %81 = tpu.matmul %78, %80, %cst_68 {dimension_numbers = #tpu.dot_dimension_numbers<[1], [0], [0], [1], [0, 0, 1, 1], [], []>} : vector<16x32xbf16>, vector<32x32xbf16>, vector<16x32xf32> -> vector<16x32xf32>
    %82 = arith.addf %77, %81 : vector<16x32xf32>
    %83 = vector.extract_strided_slice %76 {offsets = [1, 0], sizes = [16, 32], strides = [1, 1]} : vector<20x32xbf16> to vector<16x32xbf16>
    %c1_69 = arith.constant 1 : index
    %c0_70 = arith.constant 0 : index
    %c0_71 = arith.constant 0 : index
    %84 = vector.load %arg6[%c1_69, %c0_70, %c0_71] : memref<5x32x32xbf16, #tpu.memory_space<vmem>>, vector<1x32x32xbf16>
    %85 = vector.shape_cast %84 : vector<1x32x32xbf16> to vector<32x32xbf16>
    %cst_72 = arith.constant dense<0.000000e+00> : vector<16x32xf32>
    %86 = tpu.matmul %83, %85, %cst_72 {dimension_numbers = #tpu.dot_dimension_numbers<[1], [0], [0], [1], [0, 0, 1, 1], [], []>} : vector<16x32xbf16>, vector<32x32xbf16>, vector<16x32xf32> -> vector<16x32xf32>
    %87 = arith.addf %82, %86 : vector<16x32xf32>
    %88 = vector.extract_strided_slice %76 {offsets = [2, 0], sizes = [16, 32], strides = [1, 1]} : vector<20x32xbf16> to vector<16x32xbf16>
    %c2_73 = arith.constant 2 : index
    %c0_74 = arith.constant 0 : index
    %c0_75 = arith.constant 0 : index
    %89 = vector.load %arg6[%c2_73, %c0_74, %c0_75] : memref<5x32x32xbf16, #tpu.memory_space<vmem>>, vector<1x32x32xbf16>
    %90 = vector.shape_cast %89 : vector<1x32x32xbf16> to vector<32x32xbf16>
    %cst_76 = arith.constant dense<0.000000e+00> : vector<16x32xf32>
    %91 = tpu.matmul %88, %90, %cst_76 {dimension_numbers = #tpu.dot_dimension_numbers<[1], [0], [0], [1], [0, 0, 1, 1], [], []>} : vector<16x32xbf16>, vector<32x32xbf16>, vector<16x32xf32> -> vector<16x32xf32>
    %92 = arith.addf %87, %91 : vector<16x32xf32>
    %93 = vector.extract_strided_slice %76 {offsets = [3, 0], sizes = [16, 32], strides = [1, 1]} : vector<20x32xbf16> to vector<16x32xbf16>
    %c3_77 = arith.constant 3 : index
    %c0_78 = arith.constant 0 : index
    %c0_79 = arith.constant 0 : index
    %94 = vector.load %arg6[%c3_77, %c0_78, %c0_79] : memref<5x32x32xbf16, #tpu.memory_space<vmem>>, vector<1x32x32xbf16>
    %95 = vector.shape_cast %94 : vector<1x32x32xbf16> to vector<32x32xbf16>
    %cst_80 = arith.constant dense<0.000000e+00> : vector<16x32xf32>
    %96 = tpu.matmul %93, %95, %cst_80 {dimension_numbers = #tpu.dot_dimension_numbers<[1], [0], [0], [1], [0, 0, 1, 1], [], []>} : vector<16x32xbf16>, vector<32x32xbf16>, vector<16x32xf32> -> vector<16x32xf32>
    %97 = arith.addf %92, %96 : vector<16x32xf32>
    %98 = vector.extract_strided_slice %76 {offsets = [4, 0], sizes = [16, 32], strides = [1, 1]} : vector<20x32xbf16> to vector<16x32xbf16>
    %c4_81 = arith.constant 4 : index
    %c0_82 = arith.constant 0 : index
    %c0_83 = arith.constant 0 : index
    %99 = vector.load %arg6[%c4_81, %c0_82, %c0_83] : memref<5x32x32xbf16, #tpu.memory_space<vmem>>, vector<1x32x32xbf16>
    %100 = vector.shape_cast %99 : vector<1x32x32xbf16> to vector<32x32xbf16>
    %cst_84 = arith.constant dense<0.000000e+00> : vector<16x32xf32>
    %101 = tpu.matmul %98, %100, %cst_84 {dimension_numbers = #tpu.dot_dimension_numbers<[1], [0], [0], [1], [0, 0, 1, 1], [], []>} : vector<16x32xbf16>, vector<32x32xbf16>, vector<16x32xf32> -> vector<16x32xf32>
    %102 = arith.addf %97, %101 : vector<16x32xf32>
    %c0_85 = arith.constant 0 : index
    %c0_86 = arith.constant 0 : index
    %103 = vector.load %arg7[%c0_85, %c0_86] : memref<1x32xf32, #tpu.memory_space<vmem>>, vector<1x32xf32>
    %104 = vector.broadcast %103 : vector<1x32xf32> to vector<16x32xf32>
    %105 = arith.addf %102, %104 : vector<16x32xf32>
    %106 = math.tanh %105 : vector<16x32xf32>
    %107 = arith.truncf %106 : vector<16x32xf32> to vector<16x32xbf16>
    %c2_87 = arith.constant 2 : index
    %c0_88 = arith.constant 0 : index
    %108 = vector.load %arg14[%c2_87, %c0_88] : memref<20x32xbf16, #tpu.memory_space<vmem>>, vector<16x32xbf16>
    tpu.vector_store %arg14[%c2_87, %c0_88], %107 {strides = array<i32>} : memref<20x32xbf16, #tpu.memory_space<vmem>>, vector<16x32xbf16>,
    %c0_89 = arith.constant 0 : index
    %c0_90 = arith.constant 0 : index
    %109 = vector.load %arg14[%c0_89, %c0_90] : memref<20x32xbf16, #tpu.memory_space<vmem>>, vector<20x32xbf16>
    %cst_91 = arith.constant 0.000000e+00 : f32
    %110 = vector.broadcast %cst_91 : f32 to vector<16x32xf32>
    %111 = vector.extract_strided_slice %109 {offsets = [0, 0], sizes = [16, 32], strides = [1, 1]} : vector<20x32xbf16> to vector<16x32xbf16>
    %c0_92 = arith.constant 0 : index
    %c0_93 = arith.constant 0 : index
    %c0_94 = arith.constant 0 : index
    %112 = vector.load %arg8[%c0_92, %c0_93, %c0_94] : memref<5x32x32xbf16, #tpu.memory_space<vmem>>, vector<1x32x32xbf16>
    %113 = vector.shape_cast %112 : vector<1x32x32xbf16> to vector<32x32xbf16>
    %cst_95 = arith.constant dense<0.000000e+00> : vector<16x32xf32>
    %114 = tpu.matmul %111, %113, %cst_95 {dimension_numbers = #tpu.dot_dimension_numbers<[1], [0], [0], [1], [0, 0, 1, 1], [], []>} : vector<16x32xbf16>, vector<32x32xbf16>, vector<16x32xf32> -> vector<16x32xf32>
    %115 = arith.addf %110, %114 : vector<16x32xf32>
    %116 = vector.extract_strided_slice %109 {offsets = [1, 0], sizes = [16, 32], strides = [1, 1]} : vector<20x32xbf16> to vector<16x32xbf16>
    %c1_96 = arith.constant 1 : index
    %c0_97 = arith.constant 0 : index
    %c0_98 = arith.constant 0 : index
    %117 = vector.load %arg8[%c1_96, %c0_97, %c0_98] : memref<5x32x32xbf16, #tpu.memory_space<vmem>>, vector<1x32x32xbf16>
    %118 = vector.shape_cast %117 : vector<1x32x32xbf16> to vector<32x32xbf16>
    %cst_99 = arith.constant dense<0.000000e+00> : vector<16x32xf32>
    %119 = tpu.matmul %116, %118, %cst_99 {dimension_numbers = #tpu.dot_dimension_numbers<[1], [0], [0], [1], [0, 0, 1, 1], [], []>} : vector<16x32xbf16>, vector<32x32xbf16>, vector<16x32xf32> -> vector<16x32xf32>
    %120 = arith.addf %115, %119 : vector<16x32xf32>
    %121 = vector.extract_strided_slice %109 {offsets = [2, 0], sizes = [16, 32], strides = [1, 1]} : vector<20x32xbf16> to vector<16x32xbf16>
    %c2_100 = arith.constant 2 : index
    %c0_101 = arith.constant 0 : index
    %c0_102 = arith.constant 0 : index
    %122 = vector.load %arg8[%c2_100, %c0_101, %c0_102] : memref<5x32x32xbf16, #tpu.memory_space<vmem>>, vector<1x32x32xbf16>
    %123 = vector.shape_cast %122 : vector<1x32x32xbf16> to vector<32x32xbf16>
    %cst_103 = arith.constant dense<0.000000e+00> : vector<16x32xf32>
    %124 = tpu.matmul %121, %123, %cst_103 {dimension_numbers = #tpu.dot_dimension_numbers<[1], [0], [0], [1], [0, 0, 1, 1], [], []>} : vector<16x32xbf16>, vector<32x32xbf16>, vector<16x32xf32> -> vector<16x32xf32>
    %125 = arith.addf %120, %124 : vector<16x32xf32>
    %126 = vector.extract_strided_slice %109 {offsets = [3, 0], sizes = [16, 32], strides = [1, 1]} : vector<20x32xbf16> to vector<16x32xbf16>
    %c3_104 = arith.constant 3 : index
    %c0_105 = arith.constant 0 : index
    %c0_106 = arith.constant 0 : index
    %127 = vector.load %arg8[%c3_104, %c0_105, %c0_106] : memref<5x32x32xbf16, #tpu.memory_space<vmem>>, vector<1x32x32xbf16>
    %128 = vector.shape_cast %127 : vector<1x32x32xbf16> to vector<32x32xbf16>
    %cst_107 = arith.constant dense<0.000000e+00> : vector<16x32xf32>
    %129 = tpu.matmul %126, %128, %cst_107 {dimension_numbers = #tpu.dot_dimension_numbers<[1], [0], [0], [1], [0, 0, 1, 1], [], []>} : vector<16x32xbf16>, vector<32x32xbf16>, vector<16x32xf32> -> vector<16x32xf32>
    %130 = arith.addf %125, %129 : vector<16x32xf32>
    %131 = vector.extract_strided_slice %109 {offsets = [4, 0], sizes = [16, 32], strides = [1, 1]} : vector<20x32xbf16> to vector<16x32xbf16>
    %c4_108 = arith.constant 4 : index
    %c0_109 = arith.constant 0 : index
    %c0_110 = arith.constant 0 : index
    %132 = vector.load %arg8[%c4_108, %c0_109, %c0_110] : memref<5x32x32xbf16, #tpu.memory_space<vmem>>, vector<1x32x32xbf16>
    %133 = vector.shape_cast %132 : vector<1x32x32xbf16> to vector<32x32xbf16>
    %cst_111 = arith.constant dense<0.000000e+00> : vector<16x32xf32>
    %134 = tpu.matmul %131, %133, %cst_111 {dimension_numbers = #tpu.dot_dimension_numbers<[1], [0], [0], [1], [0, 0, 1, 1], [], []>} : vector<16x32xbf16>, vector<32x32xbf16>, vector<16x32xf32> -> vector<16x32xf32>
    %135 = arith.addf %130, %134 : vector<16x32xf32>
    %c0_112 = arith.constant 0 : index
    %c0_113 = arith.constant 0 : index
    %136 = vector.load %arg9[%c0_112, %c0_113] : memref<1x32xf32, #tpu.memory_space<vmem>>, vector<1x32xf32>
    %137 = vector.broadcast %136 : vector<1x32xf32> to vector<16x32xf32>
    %138 = arith.addf %135, %137 : vector<16x32xf32>
    %139 = math.tanh %138 : vector<16x32xf32>
    %140 = arith.truncf %139 : vector<16x32xf32> to vector<16x32xbf16>
    %c2_114 = arith.constant 2 : index
    %c0_115 = arith.constant 0 : index
    %141 = vector.load %arg15[%c2_114, %c0_115] : memref<20x32xbf16, #tpu.memory_space<vmem>>, vector<16x32xbf16>
    tpu.vector_store %arg15[%c2_114, %c0_115], %140 {strides = array<i32>} : memref<20x32xbf16, #tpu.memory_space<vmem>>, vector<16x32xbf16>,
    %c0_116 = arith.constant 0 : index
    %c0_117 = arith.constant 0 : index
    %142 = vector.load %arg15[%c0_116, %c0_117] : memref<20x32xbf16, #tpu.memory_space<vmem>>, vector<20x32xbf16>
    %cst_118 = arith.constant 0.000000e+00 : f32
    %143 = vector.broadcast %cst_118 : f32 to vector<16x8xf32>
    %144 = vector.extract_strided_slice %142 {offsets = [0, 0], sizes = [16, 32], strides = [1, 1]} : vector<20x32xbf16> to vector<16x32xbf16>
    %c0_119 = arith.constant 0 : index
    %c0_120 = arith.constant 0 : index
    %c0_121 = arith.constant 0 : index
    %145 = vector.load %arg10[%c0_119, %c0_120, %c0_121] : memref<5x32x8xbf16, #tpu.memory_space<vmem>>, vector<1x32x8xbf16>
    %146 = vector.shape_cast %145 : vector<1x32x8xbf16> to vector<32x8xbf16>
    %cst_122 = arith.constant dense<0.000000e+00> : vector<16x8xf32>
    %147 = tpu.matmul %144, %146, %cst_122 {dimension_numbers = #tpu.dot_dimension_numbers<[1], [0], [0], [1], [0, 0, 1, 1], [], []>} : vector<16x32xbf16>, vector<32x8xbf16>, vector<16x8xf32> -> vector<16x8xf32>
    %148 = arith.addf %143, %147 : vector<16x8xf32>
    %149 = vector.extract_strided_slice %142 {offsets = [1, 0], sizes = [16, 32], strides = [1, 1]} : vector<20x32xbf16> to vector<16x32xbf16>
    %c1_123 = arith.constant 1 : index
    %c0_124 = arith.constant 0 : index
    %c0_125 = arith.constant 0 : index
    %150 = vector.load %arg10[%c1_123, %c0_124, %c0_125] : memref<5x32x8xbf16, #tpu.memory_space<vmem>>, vector<1x32x8xbf16>
    %151 = vector.shape_cast %150 : vector<1x32x8xbf16> to vector<32x8xbf16>
    %cst_126 = arith.constant dense<0.000000e+00> : vector<16x8xf32>
    %152 = tpu.matmul %149, %151, %cst_126 {dimension_numbers = #tpu.dot_dimension_numbers<[1], [0], [0], [1], [0, 0, 1, 1], [], []>} : vector<16x32xbf16>, vector<32x8xbf16>, vector<16x8xf32> -> vector<16x8xf32>
    %153 = arith.addf %148, %152 : vector<16x8xf32>
    %154 = vector.extract_strided_slice %142 {offsets = [2, 0], sizes = [16, 32], strides = [1, 1]} : vector<20x32xbf16> to vector<16x32xbf16>
    %c2_127 = arith.constant 2 : index
    %c0_128 = arith.constant 0 : index
    %c0_129 = arith.constant 0 : index
    %155 = vector.load %arg10[%c2_127, %c0_128, %c0_129] : memref<5x32x8xbf16, #tpu.memory_space<vmem>>, vector<1x32x8xbf16>
    %156 = vector.shape_cast %155 : vector<1x32x8xbf16> to vector<32x8xbf16>
    %cst_130 = arith.constant dense<0.000000e+00> : vector<16x8xf32>
    %157 = tpu.matmul %154, %156, %cst_130 {dimension_numbers = #tpu.dot_dimension_numbers<[1], [0], [0], [1], [0, 0, 1, 1], [], []>} : vector<16x32xbf16>, vector<32x8xbf16>, vector<16x8xf32> -> vector<16x8xf32>
    %158 = arith.addf %153, %157 : vector<16x8xf32>
    %159 = vector.extract_strided_slice %142 {offsets = [3, 0], sizes = [16, 32], strides = [1, 1]} : vector<20x32xbf16> to vector<16x32xbf16>
    %c3_131 = arith.constant 3 : index
    %c0_132 = arith.constant 0 : index
    %c0_133 = arith.constant 0 : index
    %160 = vector.load %arg10[%c3_131, %c0_132, %c0_133] : memref<5x32x8xbf16, #tpu.memory_space<vmem>>, vector<1x32x8xbf16>
    %161 = vector.shape_cast %160 : vector<1x32x8xbf16> to vector<32x8xbf16>
    %cst_134 = arith.constant dense<0.000000e+00> : vector<16x8xf32>
    %162 = tpu.matmul %159, %161, %cst_134 {dimension_numbers = #tpu.dot_dimension_numbers<[1], [0], [0], [1], [0, 0, 1, 1], [], []>} : vector<16x32xbf16>, vector<32x8xbf16>, vector<16x8xf32> -> vector<16x8xf32>
    %163 = arith.addf %158, %162 : vector<16x8xf32>
    %164 = vector.extract_strided_slice %142 {offsets = [4, 0], sizes = [16, 32], strides = [1, 1]} : vector<20x32xbf16> to vector<16x32xbf16>
    %c4_135 = arith.constant 4 : index
    %c0_136 = arith.constant 0 : index
    %c0_137 = arith.constant 0 : index
    %165 = vector.load %arg10[%c4_135, %c0_136, %c0_137] : memref<5x32x8xbf16, #tpu.memory_space<vmem>>, vector<1x32x8xbf16>
    %166 = vector.shape_cast %165 : vector<1x32x8xbf16> to vector<32x8xbf16>
    %cst_138 = arith.constant dense<0.000000e+00> : vector<16x8xf32>
    %167 = tpu.matmul %164, %166, %cst_138 {dimension_numbers = #tpu.dot_dimension_numbers<[1], [0], [0], [1], [0, 0, 1, 1], [], []>} : vector<16x32xbf16>, vector<32x8xbf16>, vector<16x8xf32> -> vector<16x8xf32>
    %168 = arith.addf %163, %167 : vector<16x8xf32>
    %c0_139 = arith.constant 0 : index
    %c0_140 = arith.constant 0 : index
    %169 = vector.load %arg11[%c0_139, %c0_140] : memref<1x8xf32, #tpu.memory_space<vmem>>, vector<1x8xf32>
    %170 = vector.broadcast %169 : vector<1x8xf32> to vector<16x8xf32>
    %171 = arith.addf %168, %170 : vector<16x8xf32>
    %c0_141 = arith.constant 0 : index
    %c0_142 = arith.constant 0 : index
    %c0_143 = arith.constant 0 : index
    %172 = vector.load %arg12[%c0_141, %c0_142, %c0_143] : memref<1x16x8xf32, #tpu.memory_space<vmem>>, vector<1x16x8xf32>
    %173 = vector.shape_cast %172 : vector<1x16x8xf32> to vector<16x8xf32>
    %174 = vector.shape_cast %171 : vector<16x8xf32> to vector<1x16x8xf32>
    tpu.vector_store %arg12[%c0_141, %c0_142, %c0_143], %174 {strides = array<i32>} : memref<1x16x8xf32, #tpu.memory_space<vmem>>, vector<1x16x8xf32>,
    return
  }
  func.func @transform_0(%arg0: i32) -> (i32, i32, i32) {
    %c0_i32 = arith.constant 0 : i32
    %c0_i32_0 = arith.constant 0 : i32
    %c0_i32_1 = arith.constant 0 : i32
    return %arg0, %c0_i32, %c0_i32_0 : i32, i32, i32
  }
  func.func @transform_1(%arg0: i32) -> (i32, i32, i32) {
    %c0_i32 = arith.constant 0 : i32
    %c0_i32_0 = arith.constant 0 : i32
    %c0_i32_1 = arith.constant 0 : i32
    %c0_i32_2 = arith.constant 0 : i32
    return %c0_i32, %c0_i32_0, %c0_i32_1 : i32, i32, i32
  }
  func.func @transform_2(%arg0: i32) -> (i32, i32) {
    %c0_i32 = arith.constant 0 : i32
    %c0_i32_0 = arith.constant 0 : i32
    %c0_i32_1 = arith.constant 0 : i32
    return %c0_i32, %c0_i32_0 : i32, i32
  }
  func.func @transform_3(%arg0: i32) -> (i32, i32, i32) {
    %c0_i32 = arith.constant 0 : i32
    %c0_i32_0 = arith.constant 0 : i32
    %c0_i32_1 = arith.constant 0 : i32
    %c0_i32_2 = arith.constant 0 : i32
    return %c0_i32, %c0_i32_0, %c0_i32_1 : i32, i32, i32
  }
  func.func @transform_4(%arg0: i32) -> (i32, i32) {
    %c0_i32 = arith.constant 0 : i32
    %c0_i32_0 = arith.constant 0 : i32
    %c0_i32_1 = arith.constant 0 : i32
    return %c0_i32, %c0_i32_0 : i32, i32
  }
  func.func @transform_5(%arg0: i32) -> (i32, i32, i32) {
    %c0_i32 = arith.constant 0 : i32
    %c0_i32_0 = arith.constant 0 : i32
    %c0_i32_1 = arith.constant 0 : i32
    %c0_i32_2 = arith.constant 0 : i32
    return %c0_i32, %c0_i32_0, %c0_i32_1 : i32, i32, i32
  }
  func.func @transform_6(%arg0: i32) -> (i32, i32) {
    %c0_i32 = arith.constant 0 : i32
    %c0_i32_0 = arith.constant 0 : i32
    %c0_i32_1 = arith.constant 0 : i32
    return %c0_i32, %c0_i32_0 : i32, i32
  }
  func.func @transform_7(%arg0: i32) -> (i32, i32, i32) {
    %c0_i32 = arith.constant 0 : i32
    %c0_i32_0 = arith.constant 0 : i32
    %c0_i32_1 = arith.constant 0 : i32
    %c0_i32_2 = arith.constant 0 : i32
    return %c0_i32, %c0_i32_0, %c0_i32_1 : i32, i32, i32
  }
  func.func @transform_8(%arg0: i32) -> (i32, i32) {
    %c0_i32 = arith.constant 0 : i32
    %c0_i32_0 = arith.constant 0 : i32
    %c0_i32_1 = arith.constant 0 : i32
    return %c0_i32, %c0_i32_0 : i32, i32
  }
  func.func @transform_9(%arg0: i32) -> (i32, i32, i32) {
    %c0_i32 = arith.constant 0 : i32
    %c0_i32_0 = arith.constant 0 : i32
    %c0_i32_1 = arith.constant 0 : i32
    %c0_i32_2 = arith.constant 0 : i32
    return %c0_i32, %c0_i32_0, %c0_i32_1 : i32, i32, i32
  }
  func.func @transform_10(%arg0: i32) -> (i32, i32) {
    %c0_i32 = arith.constant 0 : i32
    %c0_i32_0 = arith.constant 0 : i32
    %c0_i32_1 = arith.constant 0 : i32
    return %c0_i32, %c0_i32_0 : i32, i32
  }
  func.func @transform_11(%arg0: i32) -> (i32, i32, i32) {
    %c0_i32 = arith.constant 0 : i32
    %c0_i32_0 = arith.constant 0 : i32
    %c0_i32_1 = arith.constant 0 : i32
    return %arg0, %c0_i32, %c0_i32_0 : i32, i32, i32
  }
}

</mosaic_0001>

<bundles_post_ra>
// kernel: tpu_custom_call.1
= control target key start
LH: loop header
LB: loop body
LE: loop exit
PB: predicated region body
PF: predicated region fallthrough
CT: control target
= control target key end

     0   :  { %16 = vsyncpa [#allocation6], 0  ;;  %s3579_s0 = inlined_call_operand.vmem [shape: f32[2,16,8], index: 0, kind: input, shape index: {}]   ;;  %s3580_s1 = inlined_call_operand.hbm [shape: bf16[5,8,32], index: 1, kind: input, shape index: {}]   ;;  %s3581_s2 = inlined_call_operand.vmem [shape: f32[1,32], index: 2, kind: input, shape index: {}]   ;;  %s3582_s3 = inlined_call_operand.vmem [shape: bf16[5,32,32], index: 3, kind: input, shape index: {}]   ;;  %s3583_s4 = inlined_call_operand.vmem [shape: f32[1,32], index: 4, kind: input, shape index: {}]   ;;  %s3584_s5 = inlined_call_operand.vmem [shape: bf16[5,32,32], index: 5, kind: input, shape index: {}]   ;;  %s3585_s6 = inlined_call_operand.hbm [shape: f32[1,32], index: 6, kind: input, shape index: {}]   ;;  %s3586_s7 = inlined_call_operand.hbm [shape: bf16[5,32,32], index: 7, kind: input, shape index: {}]   ;;  %s3587_s8 = inlined_call_operand.hbm [shape: f32[1,32], index: 8, kind: input, shape index: {}]   ;;  %s3588_s9 = inlined_call_operand.vmem [shape: bf16[5,32,8], index: 9, kind: input, shape index: {}]   ;;  %s3589_s10 = inlined_call_operand.vmem [shape: f32[1,8], index: 10, kind: input, shape index: {}]   ;;  %s3590_s11 = inlined_call_operand.vmem [shape: f32[2,16,8], index: 11, kind: output, shape index: {}]  }
   0x1   :  { %17 = vsyncpa [#allocation8], 0 }
   0x2   :  { %18 = vsyncpa [#allocation11], 0  ;;  %s3133_s17 = smov 0  }
   0x3 LB: > { %s3064_s18 = smov [#allocation7]   ;;  %s3139_s20 = sadd.s32 4294967295, %s3062_s17   ;;  %s3062_s17 = sphi %s3133_s17, %s24_s17  }
   0x4   : > { %s329_s19 = sshll.u32 %s3064_s18, 4  ;;  %p2385_p0 = scmp.ge.s32.totalorder %s3062_s17, 1  ;;  %s3144_s19 = int_to_ptr.vmem [resolvable:$true] %s329_s19 }
   0x5   : > { %p291_p1 = scmp.lt.s32.totalorder %s3062_s17, 3  ;;  %p3591_p2 = scmp.eq.s32.totalorder %s3139_s20, 0 }
   0x6   : > { %s3065_s22 = smov [#allocation5]   ;;  %s3066_s25 = smov [#allocation9]  }
   0x7   : > { %p3146_p3 = pnand %p2385_p0, %p291_p1  ;;  %s303_s23 = sshll.u32 %s3065_s22, 4  ;;  %s3152_s23 = int_to_ptr.vmem [resolvable:$true] %s303_s23 }
   0x8   : > { %s339_s26 = sshll.u32 %s3066_s25, 4  ;;  %s3067_s27 = smov [#allocation10]   ;;  %s3160_s26 = int_to_ptr.vmem [resolvable:$true] %s339_s26 }
   0x9   : > { %s3593_s21 = scalar_select %p3146_p3, 1, 0 }
   0xa   : > { %p2828_p4 = pneg %p3146_p3  ;;  %s3162_s28 = sshll.u32 %s3067_s27, 4  ;;  %s354_s28 = int_to_ptr.vmem [resolvable:$true] %s3162_s28 }
   0xb   : > { %s2932_s12 = scalar_lea.hbm %s3585_s6, 16 }
   0xc   : > { %p3156_p5 = pnand %p3591_p2, %p2828_p4  ;;  %p2933_p6 = scmp.ne.s32.totalorder %s3585_s6, %s2932_s12 }
   0xd   : > { %p2939_p10 = scmp.lt.u32.totalorder %s2932_s12, %s3585_s6 }
   0xe   : > { %p3172_p7 = pneg %p3156_p5 }
  0x10   : > { %p2935_p8 = pnand %p3172_p7, %p2933_p6 }
  0x12   : > { %p2936_p9 = pneg %p2935_p8 }
  0x14   : > { %p2941_p11 = pnand %p2939_p10, %p2936_p9 }
  0x16   : > { %2944 = shalt.err (!%p2941_p11)
}
  0x17   : > { %s2945_s22 = scalar_lea.vmem %s3144_s19, 16  ;;  %s2952_s25 = scalar_lea.vmem %s3144_s19, 32 }
  0x18   : > { %p2946_p12 = scmp.ne.s32.totalorder %s3144_s19, %s2945_s22  ;;  %p2953_p1 = scmp.lt.s32.totalorder %s3144_s19, %s3144_s19 }
  0x19   : > { %p2954_p4 = scmp.lt.s32.totalorder %s2952_s25, %s2945_s22 }
  0x1a   : > { %p2948_p13 = pnand %p2946_p12, %p3172_p7 }
  0x1b   : > { %p2955_p6 = por %p2954_p4, %p2953_p1 }
  0x1c   : > { %p2949_p0 = pneg %p2948_p13 }
  0x1e   : > { %p2956_p8 = pnand %p2955_p6, %p2949_p0 }
  0x20   : > { %2959 = shalt.err (!%p2956_p8)
}
  0x21   : > { %2834 = dma.hbm_to_vmem [thread:$0]  (!%p3156_p5), %s3585_s6, 16, %s3144_s19, [#allocation8]  }
  0x22   : > { %s2960_s13 = scalar_lea.hbm %s3580_s1, 320 }
  0x23   : > { %p2961_p9 = scmp.ne.s32.totalorder %s3580_s1, %s2960_s13  ;;  %p2967_p12 = scmp.lt.u32.totalorder %s2960_s13, %s3580_s1 }
  0x25   : > { %p2963_p10 = pnand %p2961_p9, %p3172_p7 }
  0x27   : > { %p2964_p11 = pneg %p2963_p10 }
  0x29   : > { %p2969_p13 = pnand %p2967_p12, %p2964_p11 }
  0x2b   : > { %2972 = shalt.err (!%p2969_p13)
}
  0x2c   : > { %s2973_s19 = scalar_lea.vmem %s3152_s23, 320  ;;  %p2981_p6 = scmp.lt.s32.totalorder %s3152_s23, %s3152_s23 }
  0x2d   : > { %p2974_p0 = scmp.ne.s32.totalorder %s3152_s23, %s2973_s19  ;;  %p2982_p8 = scmp.lt.s32.totalorder %s2973_s19, %s2973_s19 }
  0x2f   : > { %p2976_p1 = pnand %p2974_p0, %p3172_p7  ;;  %p2983_p9 = por %p2982_p8, %p2981_p6 }
  0x31   : > { %p2977_p4 = pneg %p2976_p1 }
  0x33   : > { %p2984_p10 = pnand %p2983_p9, %p2977_p4 }
  0x35   : > { %2987 = shalt.err (!%p2984_p10)
}
  0x36   : > { %s3068_s25 = smov 64   ;;  %s3069_s27 = smov 4  }
  0x37   : > { %2831 = dma.hbm_to_vmem [thread:$0]  (!%p3156_p5), %s3580_s1, 320, %s3152_s23, [#allocation6], %s3068_s25, %s3068_s25, %s3069_s27  }
  0x38   : > { %s2988_s14 = scalar_lea.hbm %s3586_s7, 1280 }
  0x39   : > { %p2989_p11 = scmp.ne.s32.totalorder %s3586_s7, %s2988_s14  ;;  %p2995_p0 = scmp.lt.u32.totalorder %s2988_s14, %s3586_s7 }
  0x3b   : > { %p2991_p12 = pnand %p2989_p11, %p3172_p7 }
  0x3d   : > { %p2992_p13 = pneg %p2991_p12 }
  0x3f   : > { %p2997_p1 = pnand %p2995_p0, %p2992_p13 }
  0x41   : > { %3000 = shalt.err (!%p2997_p1)
}
  0x42   : > { %s3001_s23 = scalar_lea.vmem %s3160_s26, 1280  ;;  %p3009_p9 = scmp.lt.s32.totalorder %s3160_s26, %s3160_s26 }
  0x43   : > { %p3002_p4 = scmp.ne.s32.totalorder %s3160_s26, %s3001_s23  ;;  %p3010_p10 = scmp.lt.s32.totalorder %s3001_s23, %s3001_s23 }
  0x45   : > { %p3004_p6 = pnand %p3002_p4, %p3172_p7  ;;  %p3011_p11 = por %p3010_p10, %p3009_p9 }
  0x47   : > { %p3005_p8 = pneg %p3004_p6 }
  0x49   : > { %p3012_p12 = pnand %p3011_p11, %p3005_p8 }
  0x4b   : > { %3015 = shalt.err (!%p3012_p12)
}
  0x4c   : > { %2837 = dma.hbm_to_vmem [thread:$0]  (!%p3156_p5), %s3586_s7, 1280, %s3160_s26, [#allocation8], %s3068_s25, %s3068_s25, %s3069_s27  }
  0x4d   : > { %s3016_s14 = scalar_lea.hbm %s3587_s8, 16 }
  0x4e   : > { %p3017_p13 = scmp.ne.s32.totalorder %s3587_s8, %s3016_s14  ;;  %p3023_p4 = scmp.lt.u32.totalorder %s3016_s14, %s3587_s8 }
  0x50   : > { %p3019_p0 = pnand %p3017_p13, %p3172_p7 }
  0x52   : > { %p3020_p1 = pneg %p3019_p0 }
  0x54   : > { %p3025_p6 = pnand %p3023_p4, %p3020_p1 }
  0x56   : > { %3028 = shalt.err (!%p3025_p6)
}
  0x57   : > { %s3029_s23 = scalar_lea.vmem %s354_s28, 16  ;;  %s3036_s26 = scalar_lea.vmem %s354_s28, 32 }
  0x58   : > { %p3030_p8 = scmp.ne.s32.totalorder %s354_s28, %s3029_s23  ;;  %p3037_p11 = scmp.lt.s32.totalorder %s354_s28, %s354_s28 }
  0x59   : > { %p3038_p12 = scmp.lt.s32.totalorder %s3036_s26, %s3029_s23 }
  0x5a   : > { %p3032_p9 = pnand %p3030_p8, %p3172_p7 }
  0x5b   : > { %p3039_p2 = por %p3038_p12, %p3037_p11 }
  0x5c   : > { %p3033_p10 = pneg %p3032_p9 }
  0x5e   : > { %p3040_p3 = pnand %p3039_p2, %p3033_p10 }
  0x60   : > { %3043 = shalt.err (!%p3040_p3)
}
  0x61   : > { %2840 = dma.hbm_to_vmem [thread:$0]  (!%p3156_p5), %s3587_s8, 16, %s354_s28, [#allocation11]  }
  0x62   : > { %p3596_p13 = scmp.ne.s32.totalorder %s3593_s21, 0 }
  0x63   : > { %p3597_p0 = scmp.eq.s32.totalorder (!%p3596_p13), %s3139_s20, 0 }
  0x64   : > { %380 = sbr.rel (%p3596_p13) target bundleno = 1437 (0x59d), region = 64 }
  0x6b   : > { %3049 = dma.done.wait (%p3597_p0), [#allocation6], 320   ;;  %p3598_p7 = pmov %p3597_p0 }
  0x6c   : > { %p3599_p1 = pmov %p3597_p0 }
  0x6d   : > { %3051 = vsyncadd (%p3598_p7), [#allocation6], 4294966976 }
  0x6e   : > { %3053 = dma.done.wait (%p3599_p1), [#allocation8], 1296   ;;  %p3600_p2 = pmov %p3597_p0 }
  0x6f   : > { %p3601_p3 = pmov %p3597_p0 }
  0x70   : > { %3055 = vsyncadd (%p3600_p2), [#allocation8], 4294966000 }
  0x71   : > { %3057 = dma.done.wait (%p3601_p3), [#allocation11], 16   ;;  %p3602_p5 = pmov %p3597_p0 }
  0x72   : > { %p432_p4 = scmp.lt.s32.totalorder %s3139_s20, 1  ;;  %v3070_v0 = vmov 0.0   ;;  %vm443_vm0 = vcmask 60416   ;;  %vm446_vm1 = vcmask 58368   ;;  %vm3071_vm2 = vmmov 0   ;;  %v2868_v45 = vld [vmem:[%s3582_s3] sm:$0xff]  }
  0x73   : > { %3059 = vsyncadd (%p3602_p5), [#allocation11], 4294967280  ;;  %2622 = vmatprep.subr.bf16.mxu0 %v3070_v0  ;;  %2628 = vmatprep.subr.bf16.mxu1 %v3070_v0  ;;  %v3072_v1 = vmov 0   ;;  %vm511_vm3 = vcmask 1043456   ;;  %v485_v2 = vld [vmem:[#allocation5 + $0x4] sm:$0xf] }
  0x74   : > { %2624 = vmatprep.mubr.msk.bf16.mxu0 %vm3071_vm2, %v3070_v0  ;;  %2630 = vmatprep.mubr.msk.bf16.mxu1 %vm3071_vm2, %v3070_v0  ;;  %s3606_s20 = smov (!%p432_p4, %s3139_s20), 1  ;;  %444 = vst.msk [vmem:[#allocation2] sm:$0xf] %vm443_vm0, %v3072_v1  ;;  %445 = vst.msk [vmem:[#allocation2 + $0x4] sm:$0xf] %vm443_vm0, %v3072_v1  ;;  %vm464_vm4 = vcmask 1040384  }
  0x75   : > { %447 = vst.msk [vmem:[#allocation2 + $0x8] sm:$0x3] %vm446_vm1, %v3072_v1  ;;  %s2540_s21 = sshll.u32 %s3606_s20, 4  ;;  %v483_v3 = vld [vmem:[#allocation5] sm:$0xf]  ;;  %v513_v5 = vsel %vm511_vm3, %v485_v2, 0 }
  0x76   : > { %s436_s15 = scalar_lea.vmem %s3579_s0, %s2540_s21  ;;  %v559_v6 = vsel %vm511_vm3, %v483_v3, 0  ;;  %vm465_vm5 = vcmask 1044484   ;;  %2623 = vmatpush3.bf16.msra.mxu0 %v513_v5  ;;  %vm475_vm6 = vcmask 60417   ;;  %vm478_vm8 = vcmask 57344   ;;  %v658_v16 = vld [vmem:[#allocation5 + $0xc] sm:$0xf]  ;;  %s441_s14 = scalar_lea.vmem %s3590_s11, %s2540_s21 }
  0x77   : > { %v456_v4 = vld [vmem:[%s436_s15] sm:$0xff]  ;;  %v457_v7 = vld [vmem:[%s436_s15 + $0x8] sm:$0xff]  ;;  %2629 = vmatpush3.bf16.msra.mxu1 %v559_v6  ;;  %2634 = vmatprep.subr.bf16.mxu0 %v3070_v0  ;;  %vm3298_vm7 = vmor %vm464_vm4, %vm465_vm5  ;;  %vm507_vm9 = vcmask 64512   ;;  %vm494_vm10 = vsmask.f32 7424  ;;  %v673_v20 = vsel %vm511_vm3, %v658_v16, 0 }
  0x78   : > { %v2542_v8 = vpack.c.bf16 %v456_v4, %v456_v4  ;;  %v2543_v9 = vpack.c.bf16 %v457_v7, %v457_v7  ;;  %2640 = vmatprep.subr.bf16.mxu1 %v3070_v0  ;;  %v603_v17 = vld [vmem:[#allocation5 + $0x8] sm:$0xf]  ;;  %v719_v18 = vld [vmem:[#allocation5 + $0x10] sm:$0xf]  ;;  %vm659_vm11 = vsmask.f32 6400 }
  0x79   : > { %v612_v24 = vsel %vm511_vm3, %v603_v17, 0  ;;  %v728_v25 = vsel %vm511_vm3, %v719_v18, 0  ;;  %vm604_vm12 = vcmask 1046528   ;;  %vm720_vm13 = vcmask 1045504   ;;  %v2870_v46 = vld [vmem:[%s3582_s3 + $0x10] sm:$0xff]   ;;  %v2869_v47 = vld [vmem:[%s3582_s3 + $0x8] sm:$0xff]  }
  0x7a   : > { %v467_v10 = vrot.slane %v2542_v8, 7  ;;  %v469_v12 = vrot.slane %v2543_v9, 7  ;;  %vm448_vm14 = vcmask 257024   ;;  %vm451_vm15 = vcmask 254976   ;;  %v2873_v48 = vld [vmem:[%s3582_s3 + $0x18] sm:$0xff]  }
  0x7b   : > { %449 = vst.msk [vmem:[#allocation3] sm:$0xf] %vm448_vm14, %v3072_v1  ;;  %450 = vst.msk [vmem:[#allocation3 + $0x4] sm:$0xf] %vm448_vm14, %v3072_v1  ;;  %v2409_v9 = vld [vmem:[%s3581_s2] ss:$0 sm:$0xff] }
  0x7c   : > { %v468_v13 = vrot.slane %v467_v10, 4  ;;  %476 = vst.msk [vmem:[#allocation2] sm:$0xe] %vm475_vm6, %v467_v10  ;;  %v471_v14 = vrot.slane %v469_v12, 4  ;;  %vm801_vm1 = vcmask 253952   ;;  %vm847_vm3 = vcmask 261120  }
  0x7d   : > { %453 = vst.msk [vmem:[#allocation4] sm:$0xf] %vm448_vm14, %v3072_v1  ;;  %454 = vst.msk [vmem:[#allocation4 + $0x4] sm:$0xf] %vm448_vm14, %v3072_v1  ;;  %v2910_v11 = vld [vmem:[%s3588_s9 + $0x38] sm:$0xff]  }
  0x7e   : > { %v470_v15 = vsel %vm3298_vm7, %v468_v13, %v469_v12  ;;  %479 = vst.msk [vmem:[#allocation2 + $0x8] sm:$0x1] %vm478_vm8, %v471_v14 }
  0x7f   : > { %477 = vst.msk [vmem:[#allocation2 + $0x4] sm:$0xf] %vm443_vm0, %v470_v15  ;;  %vm798_vm0 = vcmask 257025  }
  0x80   : > { %452 = vst.msk [vmem:[#allocation3 + $0x8] sm:$0x3] %vm451_vm15, %v3072_v1  ;;  %455 = vst.msk [vmem:[#allocation4 + $0x8] sm:$0x3] %vm451_vm15, %v3072_v1 }
  0x85   : > { %v2867_v21 = vld [vmem:[#allocation2 + $0x8] ss:$0 sps:$4 sm:$0x33]  }
  0x86   : > { %v2866_v19 = vld [vmem:[#allocation2] sm:$0xff]   ;;  %v503_v26 = vshll.u32 %v2867_v21, 16  ;;  %v663_v28 = vshrl.u32 %v2867_v21, 16  ;;  %v606_v32 = vrot.slane %v2867_v21, 1  ;;  %v722_v37 = vrot.slane %v2867_v21, 2 }
  0x87   : > { %v496_v22 = vshrl.u32 %v2866_v19, 16  ;;  %v498_v23 = vshll.u32 %v2866_v19, 16  ;;  %2631 = vmatmul.mubr.msk.bf16.vlgmr.msra.gmra.mrb[0].mxu1 %vm507_vm9, %v2866_v19  ;;  %v605_v27 = vrot.slane %v2866_v19, 1  ;;  %v721_v29 = vrot.slane %v2866_v19, 2 }
  0x88   : > { %2641 = vmatpush3.bf16.msra.mxu1 %v673_v20  ;;  %2642 = vmatprep.mubr.msk.bf16.mxu1 %vm3071_vm2, %v3070_v0  ;;  %v505_v34 = vrot.slane %v503_v26, 1  ;;  %v666_v35 = vrot.slane %v503_v26, 2  ;;  %v665_v36 = vrot.slane %v663_v28, 1 }
  0x89   : > { %v500_v30 = vrot.slane %v498_v23, 1  ;;  %v660_v31 = vrot.slane %v496_v22, 1  ;;  %v661_v33 = vrot.slane %v498_v23, 2  ;;  %2652 = vmatprep.subr.bf16.mxu1 %v3070_v0  ;;  %v607_v43 = vsel %vm604_vm12, %v605_v27, %v606_v32  ;;  %v2872_v27 = vld [vmem:[%s3582_s3 + $0x30] sm:$0xff]   ;;  %v2874_v32 = vld [vmem:[%s3582_s3 + $0x38] sm:$0xff]  }
  0x8a   : > { %v667_v40 = vor.u32 %v666_v35, %v665_v36  ;;  %v723_v44 = vsel %vm720_vm13, %v721_v29, %v722_v37 }
  0x8b   : > { %v501_v38 = vor.u32 %v500_v30, %v496_v22  ;;  %v662_v39 = vor.u32 %v661_v33, %v660_v31 }
  0x8d   : > { %v506_v41 = vsel %vm494_vm10, %v501_v38, %v505_v34  ;;  %v668_v42 = vsel %vm659_vm11, %v662_v39, %v667_v40 }
  0x8e   : > { %2625 = vmatmul.mubr.msk.bf16.vlgmr.msra.gmra.mrb[0].mxu0 %vm507_vm9, %v506_v41 }
  0x8f   : > { %2635 = vmatpush3.bf16.msra.mxu0 %v612_v24  ;;  %2636 = vmatprep.mubr.msk.bf16.mxu0 %vm3071_vm2, %v3070_v0 }
  0x90   : > { %2646 = vmatprep.subr.bf16.mxu0 %v3070_v0  ;;  %2643 = vmatmul.mubr.msk.bf16.vlgmr.msra.gmra.mrb[4].mxu1 %vm507_vm9, %v668_v42  ;;  %v2876_v42 = vld [vmem:[%s3582_s3 + $0x20] sm:$0xff]  }
  0x91   : > { %2656 = vmatprep.mubr.msk.bf16.mxu1 %vm3071_vm2, %v3070_v0  ;;  %2653 = vmatpush3.bf16.msra.mxu1 %v2870_v46 }
  0x92   : > { %2654 = vmatprep.subr.bf16.mxu1 %v3070_v0 }
  0x95   : > { %2655 = vmatpush3.bf16.msra.mxu1 %v2873_v48 }
  0x96   : > { %2637 = vmatmul.mubr.msk.bf16.vlgmr.msra.gmra.mrb[4].mxu0 %vm507_vm9, %v607_v43  ;;  %2668 = vmatprep.subr.bf16.mxu1 %v3070_v0 }
  0x97   : > { %2647 = vmatpush3.bf16.msra.mxu0 %v728_v25  ;;  %2648 = vmatprep.mubr.msk.bf16.mxu0 %vm3071_vm2, %v3070_v0 }
  0x98   : > { %2660 = vmatprep.subr.bf16.mxu0 %v3070_v0 }
  0x9e   : > { %2649 = vmatmul.mubr.msk.bf16.vlgmr.msra.gmra.mrb[8].mxu0 %vm507_vm9, %v723_v44 }
  0x9f   : > { %2664 = vmatprep.mubr.msk.bf16.mxu0 %vm3071_vm2, %v3070_v0  ;;  %2661 = vmatpush3.bf16.msra.mxu0 %v2868_v45 }
  0xa0   : > { %2662 = vmatprep.subr.bf16.mxu0 %v3070_v0 }
  0xa3   : > { %2663 = vmatpush3.bf16.msra.mxu0 %v2869_v47  ;;  %v2877_v47 = vld [vmem:[%s3582_s3 + $0x28] sm:$0xff]  }
  0xa4   : > { %2676 = vmatprep.subr.bf16.mxu0 %v3070_v0 }
 0x15a   : > { %v595_v49 = vpop.f32.mrb[0].mxu1 }
 0x15b   : > { %v2632_v50 = vpop.f32.mrb[1].mxu1 }
 0x15c   : > { %v598_v51 = vpop.f32.mrb[2].mxu1  ;;  %v2878_v50 = vld [vmem:[%s3582_s3 + $0x40] sm:$0xff]  }
 0x15d   : > { %v2633_v52 = vpop.f32.mrb[3].mxu1 }
 0x15e   : > { %v2879_v52 = vld [vmem:[%s3582_s3 + $0x48] sm:$0xff]  }
 0x161   : > { %v549_v53 = vpop.f32.mrb[0].mxu0 }
 0x162   : > { %v596_v54 = vadd.f32 %v595_v49, %v549_v53  ;;  %v2626_v55 = vpop.f32.mrb[1].mxu0 }
 0x163   : > { %v552_v56 = vpop.f32.mrb[2].mxu0  ;;  %v709_v57 = vpop.f32.mrb[4].mxu1 }
 0x164   : > { %v599_v58 = vadd.f32 %v598_v51, %v552_v56  ;;  %v2627_v59 = vpop.f32.mrb[3].mxu0  ;;  %v2644_v60 = vpop.f32.mrb[5].mxu1  ;;  %v2880_v56 = vld [vmem:[%s3584_s5] sm:$0xff]  }
 0x165   : > { %v712_v61 = vpop.f32.mrb[6].mxu1  ;;  %v2885_v59 = vld [vmem:[%s3584_s5 + $0x18] sm:$0xff]  }
 0x166   : > { %v2645_v62 = vpop.f32.mrb[7].mxu1 }
 0x169   : > { %v648_v63 = vpop.f32.mrb[4].mxu0 }
 0x16a   : > { %v655_v1 = vadd.f32 %v648_v63, %v596_v54  ;;  %v2638_v2 = vpop.f32.mrb[5].mxu0 }
 0x16b   : > { %v651_v3 = vpop.f32.mrb[6].mxu0 }
 0x16c   : > { %v656_v4 = vadd.f32 %v651_v3, %v599_v58  ;;  %v716_v5 = vadd.f32 %v709_v57, %v655_v1  ;;  %v2639_v6 = vpop.f32.mrb[7].mxu0  ;;  %v2882_v57 = vld [vmem:[%s3584_s5 + $0x10] sm:$0xff]   ;;  %v2881_v58 = vld [vmem:[%s3584_s5 + $0x8] sm:$0xff]  }
 0x16e   : > { %v717_v7 = vadd.f32 %v712_v61, %v656_v4 }
 0x171   : > { %v764_v8 = vpop.f32.mrb[8].mxu0 }
 0x172   : > { %v771_v10 = vadd.f32 %v764_v8, %v716_v5  ;;  %v2650_v12 = vpop.f32.mrb[9].mxu0 }
 0x173   : > { %v767_v13 = vpop.f32.mrb[10].mxu0 }
 0x174   : > { %v780_v14 = vadd.f32 %v2409_v9, %v771_v10  ;;  %v772_v15 = vadd.f32 %v767_v13, %v717_v7  ;;  %v2651_v16 = vpop.f32.mrb[11].mxu0 }
 0x176   : > { %2916 = vtanh.f32 %v780_v14  ;;  %v781_v17 = vadd.f32 %v2409_v9, %v772_v15 }
 0x178   : > { %2918 = vtanh.f32 %v781_v17 }
 0x180   : > { %v2917_v18 = vpop.eup %2916 }
 0x181   : > { %v2544_v19 = vpack.c.bf16 %v2917_v18, %v2917_v18 }
 0x182   : > { %v2919_v20 = vpop.eup %2918 }
 0x183   : > { %v790_v21 = vrot.slane %v2544_v19, 7  ;;  %v2545_v22 = vpack.c.bf16 %v2919_v20, %v2919_v20 }
 0x185   : > { %v791_v23 = vrot.slane %v790_v21, 4  ;;  %799 = vst.msk [vmem:[#allocation3] sm:$0xe] %vm798_vm0, %v790_v21  ;;  %v792_v24 = vrot.slane %v2545_v22, 7  ;;  %v2445_v21 = vld [vmem:[%s3583_s4] ss:$0 sm:$0xff] }
 0x187   : > { %v793_v25 = vsel %vm3298_vm7, %v791_v23, %v792_v24  ;;  %v794_v26 = vrot.slane %v792_v24, 4 }
 0x188   : > { %800 = vst.msk [vmem:[#allocation3 + $0x4] sm:$0xf] %vm448_vm14, %v793_v25 }
 0x189   : > { %802 = vst.msk [vmem:[#allocation3 + $0x8] sm:$0x1] %vm801_vm1, %v794_v26 }
 0x18f   : > { %v2871_v28 = vld [vmem:[#allocation3] sm:$0xff]  }
 0x190   : > { %v2875_v29 = vld [vmem:[#allocation3 + $0x8] ss:$0 sps:$4 sm:$0x33]   ;;  %2665 = vmatmul.mubr.msk.bf16.vlgmr.msra.gmra.mrb[12].mxu0 %vm847_vm3, %v2871_v28  ;;  %v824_v30 = vshrl.u32 %v2871_v28, 16  ;;  %v826_v31 = vshll.u32 %v2871_v28, 16  ;;  %v952_v48 = vrot.slane %v2871_v28, 1 }
 0x191   : > { %2677 = vmatpush3.bf16.msra.mxu0 %v2872_v27  ;;  %v831_v33 = vshll.u32 %v2875_v29, 16  ;;  %2680 = vmatprep.mubr.msk.bf16.mxu0 %vm3071_vm2, %v3070_v0  ;;  %v1021_v34 = vshrl.u32 %v2875_v29, 16  ;;  %v953_v49 = vrot.slane %v2875_v29, 1  ;;  %v1090_v53 = vrot.slane %v2871_v28, 2 }
 0x192   : > { %2678 = vmatprep.subr.bf16.mxu0 %v3070_v0  ;;  %v828_v35 = vrot.slane %v826_v31, 1  ;;  %v1018_v36 = vrot.slane %v824_v30, 1  ;;  %v1019_v37 = vrot.slane %v826_v31, 2  ;;  %v1091_v54 = vrot.slane %v2875_v29, 2 }
 0x193   : > { %v833_v38 = vrot.slane %v831_v33, 1  ;;  %v1023_v39 = vrot.slane %v1021_v34, 1  ;;  %v1024_v40 = vrot.slane %v831_v33, 2  ;;  %v954_v51 = vsel %vm604_vm12, %v952_v48, %v953_v49 }
 0x194   : > { %v829_v41 = vor.u32 %v828_v35, %v824_v30  ;;  %v1020_v43 = vor.u32 %v1019_v37, %v1018_v36  ;;  %v1092_v55 = vsel %vm720_vm13, %v1090_v53, %v1091_v54  ;;  %v2888_v53 = vld [vmem:[%s3584_s5 + $0x20] sm:$0xff]  }
 0x195   : > { %2679 = vmatpush3.bf16.msra.mxu0 %v2874_v32  ;;  %v1025_v44 = vor.u32 %v1024_v40, %v1023_v39 }
 0x196   : > { %v834_v45 = vsel %vm494_vm10, %v829_v41, %v833_v38  ;;  %2692 = vmatprep.subr.bf16.mxu0 %v3070_v0  ;;  %v2884_v38 = vld [vmem:[%s3584_s5 + $0x30] sm:$0xff]  }
 0x197   : > { %2657 = vmatmul.mubr.msk.bf16.vlgmr.msra.gmra.mrb[8].mxu1 %vm847_vm3, %v834_v45  ;;  %v1026_v46 = vsel %vm659_vm11, %v1020_v43, %v1025_v44  ;;  %v2886_v43 = vld [vmem:[%s3584_s5 + $0x38] sm:$0xff]  }
 0x198   : > { %2669 = vmatpush3.bf16.msra.mxu1 %v2876_v42  ;;  %2681 = vmatmul.mubr.msk.bf16.vlgmr.msra.gmra.mrb[16].mxu0 %vm847_vm3, %v1026_v46 }
 0x199   : > { %2670 = vmatprep.subr.bf16.mxu1 %v3070_v0  ;;  %2672 = vmatprep.mubr.msk.bf16.mxu1 %vm3071_vm2, %v3070_v0 }
 0x19a   : > { %2696 = vmatprep.mubr.msk.bf16.mxu0 %vm3071_vm2, %v3070_v0  ;;  %2693 = vmatpush3.bf16.msra.mxu0 %v2882_v57 }
 0x19b   : > { %2694 = vmatprep.subr.bf16.mxu0 %v3070_v0 }
 0x19c   : > { %2671 = vmatpush3.bf16.msra.mxu1 %v2877_v47 }
 0x19d   : > { %2684 = vmatprep.subr.bf16.mxu1 %v3070_v0 }
 0x19e   : > { %2695 = vmatpush3.bf16.msra.mxu0 %v2885_v59 }
 0x19f   : > { %2673 = vmatmul.mubr.msk.bf16.vlgmr.msra.gmra.mrb[12].mxu1 %vm847_vm3, %v954_v51  ;;  %2708 = vmatprep.subr.bf16.mxu0 %v3070_v0 }
 0x1a0   : > { %2685 = vmatpush3.bf16.msra.mxu1 %v2878_v50  ;;  %2688 = vmatprep.mubr.msk.bf16.mxu1 %vm3071_vm2, %v3070_v0 }
 0x1a1   : > { %2686 = vmatprep.subr.bf16.mxu1 %v3070_v0 }
 0x1a4   : > { %2687 = vmatpush3.bf16.msra.mxu1 %v2879_v52 }
 0x1a5   : > { %2700 = vmatprep.subr.bf16.mxu1 %v3070_v0 }
 0x1a7   : > { %2689 = vmatmul.mubr.msk.bf16.vlgmr.msra.gmra.mrb[16].mxu1 %vm847_vm3, %v1092_v55 }
 0x1a8   : > { %2704 = vmatprep.mubr.msk.bf16.mxu1 %vm3071_vm2, %v3070_v0  ;;  %2701 = vmatpush3.bf16.msra.mxu1 %v2880_v56 }
 0x1a9   : > { %2702 = vmatprep.subr.bf16.mxu1 %v3070_v0 }
 0x1ac   : > { %2703 = vmatpush3.bf16.msra.mxu1 %v2881_v58  ;;  %v2889_v58 = vld [vmem:[%s3584_s5 + $0x28] sm:$0xff]  }
 0x1ad   : > { %2716 = vmatprep.subr.bf16.mxu1 %v3070_v0 }
 0x263   : > { %v940_v60 = vpop.f32.mrb[12].mxu0 }
 0x264   : > { %v2666_v61 = vpop.f32.mrb[13].mxu0 }
 0x265   : > { %v943_v62 = vpop.f32.mrb[14].mxu0  ;;  %v2890_v61 = vld [vmem:[%s3584_s5 + $0x40] sm:$0xff]  }
 0x266   : > { %v2667_v63 = vpop.f32.mrb[15].mxu0 }
 0x267   : > { %v2891_v63 = vld [vmem:[%s3584_s5 + $0x48] sm:$0xff]  }
 0x26a   : > { %v885_v1 = vpop.f32.mrb[8].mxu1 }
 0x26b   : > { %v941_v2 = vadd.f32 %v940_v60, %v885_v1  ;;  %v2658_v3 = vpop.f32.mrb[9].mxu1  ;;  %v1076_v4 = vpop.f32.mrb[16].mxu0 }
 0x26c   : > { %v888_v5 = vpop.f32.mrb[10].mxu1  ;;  %v2682_v6 = vpop.f32.mrb[17].mxu0 }
 0x26d   : > { %v944_v7 = vadd.f32 %v943_v62, %v888_v5  ;;  %v2659_v8 = vpop.f32.mrb[11].mxu1  ;;  %v1079_v9 = vpop.f32.mrb[18].mxu0  ;;  %v2894_v5 = vld [vmem:[#allocation9 + $0x10] sm:$0xff]   ;;  %v2893_v6 = vld [vmem:[#allocation9 + $0x8] sm:$0xff]  }
 0x26e   : > { %v2683_v10 = vpop.f32.mrb[19].mxu0 }
 0x272   : > { %v1004_v12 = vpop.f32.mrb[12].mxu1 }
 0x273   : > { %v1011_v13 = vadd.f32 %v1004_v12, %v941_v2  ;;  %v2674_v14 = vpop.f32.mrb[13].mxu1 }
 0x274   : > { %v1007_v15 = vpop.f32.mrb[14].mxu1 }
 0x275   : > { %v1012_v16 = vadd.f32 %v1007_v15, %v944_v7  ;;  %v2675_v17 = vpop.f32.mrb[15].mxu1  ;;  %v1083_v18 = vadd.f32 %v1076_v4, %v1011_v13  ;;  %v2892_v4 = vld [vmem:[#allocation9] sm:$0xff]   ;;  %v2897_v7 = vld [vmem:[#allocation9 + $0x18] sm:$0xff]  }
 0x277   : > { %v1084_v19 = vadd.f32 %v1079_v9, %v1012_v16 }
 0x27a   : > { %v1142_v20 = vpop.f32.mrb[16].mxu1 }
 0x27b   : > { %v1149_v22 = vadd.f32 %v1142_v20, %v1083_v18  ;;  %v2690_v23 = vpop.f32.mrb[17].mxu1 }
 0x27c   : > { %v1145_v24 = vpop.f32.mrb[18].mxu1 }
 0x27d   : > { %v1158_v25 = vadd.f32 %v2445_v21, %v1149_v22  ;;  %v1150_v26 = vadd.f32 %v1145_v24, %v1084_v19  ;;  %v2691_v27 = vpop.f32.mrb[19].mxu1 }
 0x27f   : > { %2920 = vtanh.f32 %v1158_v25  ;;  %v1159_v28 = vadd.f32 %v2445_v21, %v1150_v26 }
 0x281   : > { %2922 = vtanh.f32 %v1159_v28 }
 0x289   : > { %v2921_v29 = vpop.eup %2920 }
 0x28a   : > { %v2546_v30 = vpack.c.bf16 %v2921_v29, %v2921_v29 }
 0x28b   : > { %v2923_v31 = vpop.eup %2922 }
 0x28c   : > { %v1168_v32 = vrot.slane %v2546_v30, 7  ;;  %v2547_v33 = vpack.c.bf16 %v2923_v31, %v2923_v31 }
 0x28e   : > { %v1169_v34 = vrot.slane %v1168_v32, 4  ;;  %1176 = vst.msk [vmem:[#allocation4] sm:$0xe] %vm798_vm0, %v1168_v32  ;;  %v1170_v35 = vrot.slane %v2547_v33, 7  ;;  %v2481_v32 = vld [vmem:[#allocation7] ss:$0 sm:$0xff] }
 0x290   : > { %v1171_v36 = vsel %vm3298_vm7, %v1169_v34, %v1170_v35  ;;  %v1172_v37 = vrot.slane %v1170_v35, 4 }
 0x291   : > { %1177 = vst.msk [vmem:[#allocation4 + $0x4] sm:$0xf] %vm448_vm14, %v1171_v36 }
 0x292   : > { %1178 = vst.msk [vmem:[#allocation4 + $0x8] sm:$0x1] %vm801_vm1, %v1172_v37 }
 0x298   : > { %v2883_v39 = vld [vmem:[#allocation4] sm:$0xff]  }
 0x299   : > { %v2887_v40 = vld [vmem:[#allocation4 + $0x8] ss:$0 sps:$4 sm:$0x33]   ;;  %2705 = vmatmul.mubr.msk.bf16.vlgmr.msra.gmra.mrb[20].mxu1 %vm847_vm3, %v2883_v39  ;;  %v1200_v41 = vshrl.u32 %v2883_v39, 16  ;;  %v1202_v42 = vshll.u32 %v2883_v39, 16  ;;  %v1327_v59 = vrot.slane %v2883_v39, 1 }
 0x29a   : > { %2717 = vmatpush3.bf16.msra.mxu1 %v2884_v38  ;;  %v1207_v44 = vshll.u32 %v2887_v40, 16  ;;  %2720 = vmatprep.mubr.msk.bf16.mxu1 %vm3071_vm2, %v3070_v0  ;;  %v1396_v45 = vshrl.u32 %v2887_v40, 16  ;;  %v1328_v60 = vrot.slane %v2887_v40, 1  ;;  %v1465_v1 = vrot.slane %v2883_v39, 2 }
 0x29b   : > { %2718 = vmatprep.subr.bf16.mxu1 %v3070_v0  ;;  %v1204_v46 = vrot.slane %v1202_v42, 1  ;;  %v1393_v47 = vrot.slane %v1200_v41, 1  ;;  %v1394_v48 = vrot.slane %v1202_v42, 2  ;;  %v1466_v2 = vrot.slane %v2887_v40, 2 }
 0x29c   : > { %v1209_v49 = vrot.slane %v1207_v44, 1  ;;  %v1398_v50 = vrot.slane %v1396_v45, 1  ;;  %v1399_v51 = vrot.slane %v1207_v44, 2  ;;  %v1329_v62 = vsel %vm604_vm12, %v1327_v59, %v1328_v60 }
 0x29d   : > { %v1205_v52 = vor.u32 %v1204_v46, %v1200_v41  ;;  %v1395_v54 = vor.u32 %v1394_v48, %v1393_v47  ;;  %v1467_v3 = vsel %vm720_vm13, %v1465_v1, %v1466_v2  ;;  %v2900_v1 = vld [vmem:[#allocation9 + $0x20] sm:$0xff]  }
 0x29e   : > { %2719 = vmatpush3.bf16.msra.mxu1 %v2886_v43  ;;  %v1400_v55 = vor.u32 %v1399_v51, %v1398_v50 }
 0x29f   : > { %v1210_v56 = vsel %vm494_vm10, %v1205_v52, %v1209_v49  ;;  %2732 = vmatprep.subr.bf16.mxu1 %v3070_v0  ;;  %v2896_v49 = vld [vmem:[#allocation9 + $0x30] sm:$0xff]  }
 0x2a0   : > { %2697 = vmatmul.mubr.msk.bf16.vlgmr.msra.gmra.mrb[20].mxu0 %vm847_vm3, %v1210_v56  ;;  %v1401_v57 = vsel %vm659_vm11, %v1395_v54, %v1400_v55  ;;  %v2898_v54 = vld [vmem:[#allocation9 + $0x38] sm:$0xff]  }
 0x2a1   : > { %2709 = vmatpush3.bf16.msra.mxu0 %v2888_v53  ;;  %2721 = vmatmul.mubr.msk.bf16.vlgmr.msra.gmra.mrb[24].mxu1 %vm847_vm3, %v1401_v57 }
 0x2a2   : > { %2710 = vmatprep.subr.bf16.mxu0 %v3070_v0  ;;  %2712 = vmatprep.mubr.msk.bf16.mxu0 %vm3071_vm2, %v3070_v0 }
 0x2a3   : > { %2736 = vmatprep.mubr.msk.bf16.mxu1 %vm3071_vm2, %v3070_v0  ;;  %2733 = vmatpush3.bf16.msra.mxu1 %v2894_v5 }
 0x2a4   : > { %2734 = vmatprep.subr.bf16.mxu1 %v3070_v0 }
 0x2a5   : > { %2711 = vmatpush3.bf16.msra.mxu0 %v2889_v58 }
 0x2a6   : > { %2724 = vmatprep.subr.bf16.mxu0 %v3070_v0 }
 0x2a7   : > { %2735 = vmatpush3.bf16.msra.mxu1 %v2897_v7 }
 0x2a8   : > { %2713 = vmatmul.mubr.msk.bf16.vlgmr.msra.gmra.mrb[24].mxu0 %vm847_vm3, %v1329_v62  ;;  %2748 = vmatprep.subr.bf16.mxu1 %v3070_v0 }
 0x2a9   : > { %2725 = vmatpush3.bf16.msra.mxu0 %v2890_v61  ;;  %2728 = vmatprep.mubr.msk.bf16.mxu0 %vm3071_vm2, %v3070_v0 }
 0x2aa   : > { %2726 = vmatprep.subr.bf16.mxu0 %v3070_v0 }
 0x2ad   : > { %2727 = vmatpush3.bf16.msra.mxu0 %v2891_v63 }
 0x2ae   : > { %2740 = vmatprep.subr.bf16.mxu0 %v3070_v0 }
 0x2b0   : > { %2729 = vmatmul.mubr.msk.bf16.vlgmr.msra.gmra.mrb[28].mxu0 %vm847_vm3, %v1467_v3 }
 0x2b1   : > { %2744 = vmatprep.mubr.msk.bf16.mxu0 %vm3071_vm2, %v3070_v0  ;;  %2741 = vmatpush3.bf16.msra.mxu0 %v2892_v4 }
 0x2b2   : > { %2742 = vmatprep.subr.bf16.mxu0 %v3070_v0 }
 0x2b5   : > { %2743 = vmatpush3.bf16.msra.mxu0 %v2893_v6  ;;  %v2901_v6 = vld [vmem:[#allocation9 + $0x28] sm:$0xff]  }
 0x2b6   : > { %2756 = vmatprep.subr.bf16.mxu0 %v3070_v0 }
 0x36c   : > { %v1315_v8 = vpop.f32.mrb[20].mxu1 }
 0x36d   : > { %v2706_v9 = vpop.f32.mrb[21].mxu1 }
 0x36e   : > { %v1318_v10 = vpop.f32.mrb[22].mxu1  ;;  %v2902_v9 = vld [vmem:[#allocation9 + $0x40] sm:$0xff]  }
 0x36f   : > { %v2707_v12 = vpop.f32.mrb[23].mxu1 }
 0x370   : > { %v2903_v12 = vld [vmem:[#allocation9 + $0x48] sm:$0xff]  }
 0x373   : > { %v1260_v13 = vpop.f32.mrb[20].mxu0 }
 0x374   : > { %v1316_v14 = vadd.f32 %v1315_v8, %v1260_v13  ;;  %v2698_v15 = vpop.f32.mrb[21].mxu0  ;;  %v1451_v16 = vpop.f32.mrb[24].mxu1 }
 0x375   : > { %v1263_v17 = vpop.f32.mrb[22].mxu0  ;;  %v2722_v18 = vpop.f32.mrb[25].mxu1 }
 0x376   : > { %v1319_v19 = vadd.f32 %v1318_v10, %v1263_v17  ;;  %v2699_v20 = vpop.f32.mrb[23].mxu0  ;;  %v1454_v21 = vpop.f32.mrb[26].mxu1  ;;  %v2906_v17 = vld [vmem:[%s3588_s9 + $0x10] sm:$0xff]   ;;  %v2905_v18 = vld [vmem:[%s3588_s9 + $0x8] sm:$0xff]  }
 0x377   : > { %v2723_v22 = vpop.f32.mrb[27].mxu1 }
 0x37b   : > { %v1379_v23 = vpop.f32.mrb[24].mxu0 }
 0x37c   : > { %v1386_v24 = vadd.f32 %v1379_v23, %v1316_v14  ;;  %v2714_v25 = vpop.f32.mrb[25].mxu0 }
 0x37d   : > { %v1382_v26 = vpop.f32.mrb[26].mxu0 }
 0x37e   : > { %v1387_v27 = vadd.f32 %v1382_v26, %v1319_v19  ;;  %v2715_v28 = vpop.f32.mrb[27].mxu0  ;;  %v1458_v29 = vadd.f32 %v1451_v16, %v1386_v24  ;;  %v2904_v16 = vld [vmem:[%s3588_s9] sm:$0xff]   ;;  %v2909_v19 = vld [vmem:[%s3588_s9 + $0x18] sm:$0xff]  }
 0x380   : > { %v1459_v30 = vadd.f32 %v1454_v21, %v1387_v27 }
 0x383   : > { %v1517_v31 = vpop.f32.mrb[28].mxu0 }
 0x384   : > { %v1524_v33 = vadd.f32 %v1517_v31, %v1458_v29  ;;  %v2730_v34 = vpop.f32.mrb[29].mxu0 }
 0x385   : > { %v1520_v35 = vpop.f32.mrb[30].mxu0 }
 0x386   : > { %v1533_v36 = vadd.f32 %v2481_v32, %v1524_v33  ;;  %v1525_v37 = vadd.f32 %v1520_v35, %v1459_v30  ;;  %v2731_v38 = vpop.f32.mrb[31].mxu0 }
 0x388   : > { %2924 = vtanh.f32 %v1533_v36  ;;  %v1534_v39 = vadd.f32 %v2481_v32, %v1525_v37 }
 0x38a   : > { %2926 = vtanh.f32 %v1534_v39 }
 0x392   : > { %v2925_v40 = vpop.eup %2924 }
 0x393   : > { %v2548_v41 = vpack.c.bf16 %v2925_v40, %v2925_v40 }
 0x394   : > { %v2927_v42 = vpop.eup %2926 }
 0x395   : > { %v1543_v43 = vrot.slane %v2548_v41, 7  ;;  %v2549_v44 = vpack.c.bf16 %v2927_v42, %v2927_v42 }
 0x397   : > { %v1544_v45 = vrot.slane %v1543_v43, 4  ;;  %1551 = vst.msk [vmem:[#allocation3] sm:$0xe] %vm798_vm0, %v1543_v43  ;;  %v1545_v46 = vrot.slane %v2549_v44, 7  ;;  %v2501_v43 = vld [vmem:[#allocation10] ss:$0 sm:$0xff] }
 0x399   : > { %v1546_v47 = vsel %vm3298_vm7, %v1544_v45, %v1545_v46  ;;  %v1547_v48 = vrot.slane %v1545_v46, 4 }
 0x39a   : > { %1552 = vst.msk [vmem:[#allocation3 + $0x4] sm:$0xf] %vm448_vm14, %v1546_v47 }
 0x39b   : > { %1553 = vst.msk [vmem:[#allocation3 + $0x8] sm:$0x1] %vm801_vm1, %v1547_v48 }
 0x3a1   : > { %v2895_v50 = vld [vmem:[#allocation3] sm:$0xff]  }
 0x3a2   : > { %v2899_v51 = vld [vmem:[#allocation3 + $0x8] ss:$0 sps:$4 sm:$0x33]   ;;  %2745 = vmatmul.mubr.msk.bf16.vlgmr.msra.gmra.mrb[32].mxu0 %vm847_vm3, %v2895_v50  ;;  %v1575_v52 = vshrl.u32 %v2895_v50, 16  ;;  %v1577_v53 = vshll.u32 %v2895_v50, 16  ;;  %v1702_v7 = vrot.slane %v2895_v50, 1 }
 0x3a3   : > { %2757 = vmatpush3.bf16.msra.mxu0 %v2896_v49  ;;  %v1582_v55 = vshll.u32 %v2899_v51, 16  ;;  %2760 = vmatprep.mubr.msk.bf16.mxu0 %vm3071_vm2, %v3070_v0  ;;  %v1771_v56 = vshrl.u32 %v2899_v51, 16  ;;  %v1703_v8 = vrot.slane %v2899_v51, 1  ;;  %v1840_v13 = vrot.slane %v2895_v50, 2 }
 0x3a4   : > { %2758 = vmatprep.subr.bf16.mxu0 %v3070_v0  ;;  %v1579_v57 = vrot.slane %v1577_v53, 1  ;;  %v1768_v58 = vrot.slane %v1575_v52, 1  ;;  %v1769_v59 = vrot.slane %v1577_v53, 2  ;;  %v1841_v14 = vrot.slane %v2899_v51, 2 }
 0x3a5   : > { %v1584_v60 = vrot.slane %v1582_v55, 1  ;;  %v1773_v61 = vrot.slane %v1771_v56, 1  ;;  %v1774_v62 = vrot.slane %v1582_v55, 2  ;;  %v1704_v10 = vsel %vm604_vm12, %v1702_v7, %v1703_v8 }
 0x3a6   : > { %v1580_v63 = vor.u32 %v1579_v57, %v1575_v52  ;;  %v1770_v2 = vor.u32 %v1769_v59, %v1768_v58  ;;  %v1842_v15 = vsel %vm720_vm13, %v1840_v13, %v1841_v14 }
 0x3a7   : > { %2759 = vmatpush3.bf16.msra.mxu0 %v2898_v54  ;;  %v1775_v3 = vor.u32 %v1774_v62, %v1773_v61 }
 0x3a8   : > { %v1585_v4 = vsel %vm494_vm10, %v1580_v63, %v1584_v60  ;;  %2772 = vmatprep.subr.bf16.mxu0 %v3070_v0  ;;  %v2908_v60 = vld [vmem:[%s3588_s9 + $0x30] sm:$0xff]  }
 0x3a9   : > { %2737 = vmatmul.mubr.msk.bf16.vlgmr.msra.gmra.mrb[28].mxu1 %vm847_vm3, %v1585_v4  ;;  %v1776_v5 = vsel %vm659_vm11, %v1770_v2, %v1775_v3 }
 0x3aa   : > { %2749 = vmatpush3.bf16.msra.mxu1 %v2900_v1  ;;  %2761 = vmatmul.mubr.msk.bf16.vlgmr.msra.gmra.mrb[36].mxu0 %vm847_vm3, %v1776_v5 }
 0x3ab   : > { %2750 = vmatprep.subr.bf16.mxu1 %v3070_v0  ;;  %2752 = vmatprep.mubr.msk.bf16.mxu1 %vm3071_vm2, %v3070_v0 }
 0x3ac   : > { %2776 = vmatprep.mubr.msk.bf16.mxu0 %vm3071_vm2, %v3070_v0  ;;  %2773 = vmatpush3.bf16.msra.mxu0 %v2906_v17  ;;  %v2913_v17 = vld [vmem:[%s3588_s9 + $0x28] sm:$0xff]  }
 0x3ad   : > { %2774 = vmatprep.subr.bf16.mxu0 %v3070_v0 }
 0x3ae   : > { %2751 = vmatpush3.bf16.msra.mxu1 %v2901_v6 }
 0x3af   : > { %2764 = vmatprep.subr.bf16.mxu1 %v3070_v0 }
 0x3b0   : > { %2775 = vmatpush3.bf16.msra.mxu0 %v2909_v19 }
 0x3b1   : > { %2753 = vmatmul.mubr.msk.bf16.vlgmr.msra.gmra.mrb[32].mxu1 %vm847_vm3, %v1704_v10  ;;  %2788 = vmatprep.subr.bf16.mxu0 %v3070_v0 }
 0x3b2   : > { %2765 = vmatpush3.bf16.msra.mxu1 %v2902_v9  ;;  %2768 = vmatprep.mubr.msk.bf16.mxu1 %vm3071_vm2, %v3070_v0 }
 0x3b3   : > { %2766 = vmatprep.subr.bf16.mxu1 %v3070_v0 }
 0x3b6   : > { %2767 = vmatpush3.bf16.msra.mxu1 %v2903_v12  ;;  %v2912_v12 = vld [vmem:[%s3588_s9 + $0x20] sm:$0xff]  }
 0x3b7   : > { %2780 = vmatprep.subr.bf16.mxu1 %v3070_v0 }
 0x3b9   : > { %2769 = vmatmul.mubr.msk.bf16.vlgmr.msra.gmra.mrb[36].mxu1 %vm847_vm3, %v1842_v15 }
 0x3ba   : > { %2784 = vmatprep.mubr.msk.bf16.mxu1 %vm3071_vm2, %v3070_v0  ;;  %2781 = vmatpush3.bf16.msra.mxu1 %v2904_v16 }
 0x3bb   : > { %2782 = vmatprep.subr.bf16.mxu1 %v3070_v0 }
 0x3be   : > { %2783 = vmatpush3.bf16.msra.mxu1 %v2905_v18 }
 0x3bf   : > { %2796 = vmatprep.subr.bf16.mxu1 %v3070_v0 }
 0x475   : > { %v1690_v20 = vpop.f32.mrb[32].mxu0 }
 0x476   : > { %v2746_v21 = vpop.f32.mrb[33].mxu0 }
 0x477   : > { %v1693_v22 = vpop.f32.mrb[34].mxu0 }
 0x478   : > { %v2747_v23 = vpop.f32.mrb[35].mxu0 }
 0x47c   : > { %v1635_v24 = vpop.f32.mrb[28].mxu1 }
 0x47d   : > { %v1691_v25 = vadd.f32 %v1690_v20, %v1635_v24  ;;  %v2738_v26 = vpop.f32.mrb[29].mxu1  ;;  %v1826_v27 = vpop.f32.mrb[36].mxu0  ;;  %v2914_v20 = vld [vmem:[%s3588_s9 + $0x40] sm:$0xff]  }
 0x47e   : > { %v1638_v28 = vpop.f32.mrb[30].mxu1  ;;  %v2762_v29 = vpop.f32.mrb[37].mxu0 }
 0x47f   : > { %v1694_v30 = vadd.f32 %v1693_v22, %v1638_v28  ;;  %v2739_v31 = vpop.f32.mrb[31].mxu1  ;;  %v1829_v32 = vpop.f32.mrb[38].mxu0  ;;  %v2915_v22 = vld [vmem:[%s3588_s9 + $0x48] sm:$0xff]  }
 0x480   : > { %v2763_v33 = vpop.f32.mrb[39].mxu0 }
 0x484   : > { %v1754_v34 = vpop.f32.mrb[32].mxu1 }
 0x485   : > { %v1761_v35 = vadd.f32 %v1754_v34, %v1691_v25  ;;  %v2754_v36 = vpop.f32.mrb[33].mxu1 }
 0x486   : > { %v1757_v37 = vpop.f32.mrb[34].mxu1 }
 0x487   : > { %v1762_v38 = vadd.f32 %v1757_v37, %v1694_v30  ;;  %v2755_v39 = vpop.f32.mrb[35].mxu1  ;;  %v1833_v40 = vadd.f32 %v1826_v27, %v1761_v35 }
 0x489   : > { %v1834_v41 = vadd.f32 %v1829_v32, %v1762_v38 }
 0x48c   : > { %v1892_v42 = vpop.f32.mrb[36].mxu1 }
 0x48d   : > { %v1899_v44 = vadd.f32 %v1892_v42, %v1833_v40  ;;  %v2770_v45 = vpop.f32.mrb[37].mxu1 }
 0x48e   : > { %v1895_v46 = vpop.f32.mrb[38].mxu1 }
 0x48f   : > { %v1908_v47 = vadd.f32 %v2501_v43, %v1899_v44  ;;  %v1900_v48 = vadd.f32 %v1895_v46, %v1834_v41  ;;  %v2771_v49 = vpop.f32.mrb[39].mxu1 }
 0x491   : > { %2928 = vtanh.f32 %v1908_v47  ;;  %v1909_v50 = vadd.f32 %v2501_v43, %v1900_v48  ;;  %v2537_v48 = vld [vmem:[%s3589_s10] ss:$0 sm:$0xff] }
 0x493   : > { %2930 = vtanh.f32 %v1909_v50 }
 0x49b   : > { %v2929_v51 = vpop.eup %2928 }
 0x49c   : > { %v2550_v52 = vpack.c.bf16 %v2929_v51, %v2929_v51 }
 0x49d   : > { %v2931_v53 = vpop.eup %2930 }
 0x49e   : > { %v1918_v54 = vrot.slane %v2550_v52, 7  ;;  %v2551_v55 = vpack.c.bf16 %v2931_v53, %v2931_v53 }
 0x4a0   : > { %v1919_v56 = vrot.slane %v1918_v54, 4  ;;  %1926 = vst.msk [vmem:[#allocation4] sm:$0xe] %vm798_vm0, %v1918_v54  ;;  %v1920_v57 = vrot.slane %v2551_v55, 7 }
 0x4a2   : > { %v1921_v58 = vsel %vm3298_vm7, %v1919_v56, %v1920_v57  ;;  %v1922_v59 = vrot.slane %v1920_v57, 4 }
 0x4a3   : > { %1927 = vst.msk [vmem:[#allocation4 + $0x4] sm:$0xf] %vm448_vm14, %v1921_v58 }
 0x4a4   : > { %1928 = vst.msk [vmem:[#allocation4 + $0x8] sm:$0x1] %vm801_vm1, %v1922_v59 }
 0x4aa   : > { %v2907_v61 = vld [vmem:[#allocation4] sm:$0xff]  }
 0x4ab   : > { %v2911_v62 = vld [vmem:[#allocation4 + $0x8] ss:$0 sps:$4 sm:$0x33]   ;;  %2785 = vmatmul.mubr.msk.bf16.vlgmr.msra.gmra.mrb[40].mxu1 %vm847_vm3, %v2907_v61  ;;  %v1950_v63 = vshrl.u32 %v2907_v61, 16  ;;  %v1952_v1 = vshll.u32 %v2907_v61, 16  ;;  %v2077_v18 = vrot.slane %v2907_v61, 1 }
 0x4ac   : > { %2797 = vmatpush3.bf16.msra.mxu1 %v2908_v60  ;;  %v1957_v2 = vshll.u32 %v2911_v62, 16  ;;  %2800 = vmatprep.mubr.msk.bf16.mxu1 %vm3071_vm2, %v3070_v0  ;;  %v2146_v3 = vshrl.u32 %v2911_v62, 16  ;;  %v2078_v19 = vrot.slane %v2911_v62, 1  ;;  %v2215_v23 = vrot.slane %v2907_v61, 2 }
 0x4ad   : > { %2798 = vmatprep.subr.bf16.mxu1 %v3070_v0  ;;  %v1954_v4 = vrot.slane %v1952_v1, 1  ;;  %v2143_v5 = vrot.slane %v1950_v63, 1  ;;  %v2144_v6 = vrot.slane %v1952_v1, 2  ;;  %v2216_v24 = vrot.slane %v2911_v62, 2 }
 0x4ae   : > { %v1959_v7 = vrot.slane %v1957_v2, 1  ;;  %v2148_v8 = vrot.slane %v2146_v3, 1  ;;  %v2149_v9 = vrot.slane %v1957_v2, 2  ;;  %v2079_v21 = vsel %vm604_vm12, %v2077_v18, %v2078_v19 }
 0x4af   : > { %v1955_v10 = vor.u32 %v1954_v4, %v1950_v63  ;;  %v2145_v13 = vor.u32 %v2144_v6, %v2143_v5  ;;  %v2217_v25 = vsel %vm720_vm13, %v2215_v23, %v2216_v24 }
 0x4b0   : > { %2799 = vmatpush3.bf16.msra.mxu1 %v2910_v11  ;;  %v2150_v14 = vor.u32 %v2149_v9, %v2148_v8 }
 0x4b1   : > { %v1960_v15 = vsel %vm494_vm10, %v1955_v10, %v1959_v7 }
 0x4b2   : > { %2777 = vmatmul.mubr.msk.bf16.vlgmr.msra.gmra.mrb[40].mxu0 %vm847_vm3, %v1960_v15  ;;  %v2151_v16 = vsel %vm659_vm11, %v2145_v13, %v2150_v14 }
 0x4b3   : > { %2789 = vmatpush3.bf16.msra.mxu0 %v2912_v12  ;;  %2801 = vmatmul.mubr.msk.bf16.vlgmr.msra.gmra.mrb[44].mxu1 %vm847_vm3, %v2151_v16 }
 0x4b4   : > { %2790 = vmatprep.subr.bf16.mxu0 %v3070_v0  ;;  %2792 = vmatprep.mubr.msk.bf16.mxu0 %vm3071_vm2, %v3070_v0 }
 0x4b7   : > { %2791 = vmatpush3.bf16.msra.mxu0 %v2913_v17 }
 0x4b8   : > { %2804 = vmatprep.subr.bf16.mxu0 %v3070_v0 }
 0x4ba   : > { %2793 = vmatmul.mubr.msk.bf16.vlgmr.msra.gmra.mrb[44].mxu0 %vm847_vm3, %v2079_v21 }
 0x4bb   : > { %2805 = vmatpush3.bf16.msra.mxu0 %v2914_v20  ;;  %2808 = vmatprep.mubr.msk.bf16.mxu0 %vm3071_vm2, %v3070_v0 }
 0x4bc   : > { %2806 = vmatprep.subr.bf16.mxu0 %v3070_v0 }
 0x4bf   : > { %2807 = vmatpush3.bf16.msra.mxu0 %v2915_v22 }
 0x4c2   : > { %2809 = vmatmul.mubr.msk.bf16.vlgmr.msra.gmra.mrb[48].mxu0 %vm847_vm3, %v2217_v25 }
 0x57e   : > { %v2065_v26 = vpop.f32.mrb[40].mxu1 }
 0x57f   : > { %v2786_v27 = vpop.f32.mrb[41].mxu1 }
 0x580   : > { %v2068_v28 = vpop.f32.mrb[42].mxu1 }
 0x581   : > { %v2787_v29 = vpop.f32.mrb[43].mxu1 }
 0x585   : > { %v2010_v30 = vpop.f32.mrb[40].mxu0 }
 0x586   : > { %v2066_v31 = vadd.f32 %v2065_v26, %v2010_v30  ;;  %v2778_v32 = vpop.f32.mrb[41].mxu0  ;;  %v2201_v33 = vpop.f32.mrb[44].mxu1 }
 0x587   : > { %v2013_v34 = vpop.f32.mrb[42].mxu0  ;;  %v2802_v35 = vpop.f32.mrb[45].mxu1 }
 0x588   : > { %v2069_v36 = vadd.f32 %v2068_v28, %v2013_v34  ;;  %v2779_v0 = vpop.f32.mrb[43].mxu0  ;;  %v2204_v37 = vpop.f32.mrb[46].mxu1 }
 0x589   : > { %v2803_v38 = vpop.f32.mrb[47].mxu1 }
 0x58d   : > { %v2129_v39 = vpop.f32.mrb[44].mxu0 }
 0x58e   : > { %v2136_v40 = vadd.f32 %v2129_v39, %v2066_v31  ;;  %v2794_v41 = vpop.f32.mrb[45].mxu0 }
 0x58f   : > { %v2132_v42 = vpop.f32.mrb[46].mxu0 }
 0x590   : > { %v2137_v43 = vadd.f32 %v2132_v42, %v2069_v36  ;;  %v2795_v44 = vpop.f32.mrb[47].mxu0  ;;  %v2208_v45 = vadd.f32 %v2201_v33, %v2136_v40 }
 0x592   : > { %v2209_v46 = vadd.f32 %v2204_v37, %v2137_v43 }
 0x595   : > { %v2267_v47 = vpop.f32.mrb[48].mxu0 }
 0x596   : > { %v2274_v49 = vadd.f32 %v2267_v47, %v2208_v45  ;;  %v2810_v50 = vpop.f32.mrb[49].mxu0 }
 0x597   : > { %v2270_v51 = vpop.f32.mrb[50].mxu0 }
 0x598   : > { %v2283_v52 = vadd.f32 %v2537_v48, %v2274_v49  ;;  %v2275_v53 = vadd.f32 %v2270_v51, %v2209_v46  ;;  %v2811_v54 = vpop.f32.mrb[51].mxu0 }
 0x59a   : > { %2285 = vst.msk [vmem:[%s441_s14] sm:$0xff] %vm507_vm9, %v2283_v52  ;;  %v2284_v55 = vadd.f32 %v2537_v48, %v2275_v53 }
 0x59c   : > { %2286 = vst.msk [vmem:[%s441_s14 + $0x8] sm:$0xff] %vm507_vm9, %v2284_v55 }
 0x59d PF: > { %s24_s17 = sadd.s32 1, %s3062_s17  }
 0x59e   : > { %p21_p6 = scmp.ge.s32.totalorder %s24_s17, 4  }
 0x5a0   :  { %23 = sbr.rel (!%p21_p6) target bundleno = 3 (0x3), region = 131 }
 0x5a7   :  { %2308 = vsyncpa [#allocation6], 1 }
 0x5a8   :  { %2310 = vsyncpa [#allocation6 + $0x1], 1 }
 0x5a9   :  { %2311 = vsyncpa [#allocation8], 1 }
 0x5aa   :  { %2312 = vsyncpa [#allocation11], 1 }

</bundles_post_ra>
